<compile_context>
chip_gen: v6e
topology: v6e:2x2x1
jax: 0.10.0
libtpu: 0.0.40
codegen_flags: <defaults>
</compile_context>

<pallas_src>
import functools

import jax
import jax.numpy as jnp
from jax.experimental import pallas as pl
from jax.experimental.pallas import tpu as pltpu

C_IN = 512                 # LANet(in_dim=512) is hard-coded in LocalCNN
MID = int(C_IN * 0.5)      # 256
M = 2                      # number of LANets
MMID = M * MID             # 512: fused conv1 output channels


def local_cnn_kernel(x_ref, w1_ref, b1_ref, w2_ref, b2_ref, o_ref):
    """x_ref: (1, C, TP) io-dtype   w1_ref: (MMID, C) bf16   b1_ref: (MMID, 1) f32
       w2_ref: (M, MMID) bf16 (block-diagonal)   b2_ref: (M,) f32 in SMEM
       o_ref: (1, C, TP) io-dtype."""
    x = x_ref[0]                                   # (C, TP)
    xb = x.astype(jnp.bfloat16)                    # bf16 MXU operand

    # Fused conv1 for both LANets: one full-width MXU pass, f32 accumulation.
    h = jnp.dot(w1_ref[...], xb, preferred_element_type=jnp.float32)   # (MMID, TP)
    h = jnp.maximum(h + b1_ref[...], 0.0)          # lane-broadcast bias + ReLU (f32 VPU)

    # conv2: one output channel per LANet -> small block-diagonal matmul.
    # (On v5e, if a profile shows the MXU slot saturated after bf16 I/O, this
    #  can be replaced by a VPU multiply + sublane reduction since w2 is
    #  block-diagonal; free filler on v6e/v7x, so keep the MXU path here.)
    l = jnp.dot(w2_ref[...], h.astype(jnp.bfloat16),
                preferred_element_type=jnp.float32)                    # (M, TP)

    # sigmoid is monotone increasing: max over pre-sigmoid logits, one sigmoid.
    logit = l[0:1, :] + b2_ref[0]
    for m in range(1, M):                          # M static -> unrolled
        logit = jnp.maximum(logit, l[m:m + 1, :] + b2_ref[m])
    attn = jax.nn.sigmoid(logit)                   # (1, TP), EUP

    o_ref[0] = (x.astype(jnp.float32) * attn).astype(o_ref.dtype)


def prepare_local_cnn_params(w1, b1, w2, b2):
    """Hoisted (once per model) weight prep.
       w1: (M, MID, C)  b1: (M, MID)  w2: (M, 1, MID)  b2: (M,) (conv layout)."""
    w1f = w1.reshape(MMID, C_IN).astype(jnp.bfloat16)   # concat LANets on out-ch
    b1f = b1.reshape(MMID, 1).astype(jnp.float32)
    # Block-diagonal conv2: row m holds w2[m] in columns [m*MID, (m+1)*MID).
    w2f = jax.scipy.linalg.block_diag(
        *[w2[m, 0][None, :] for m in range(M)]).astype(jnp.bfloat16)   # (M, MMID)
    b2f = b2.reshape(M).astype(jnp.float32)
    return w1f, b1f, w2f, b2f


def _pick_lane_tile(p_pad, batch):
    """Largest lane tile (multiple of 128, <=1024) dividing p_pad that still
    leaves >= 8 grid steps (>= 4 per v7x TensorCore); else 128 to maximize
    grid occupancy for small workloads."""
    cands = [t for t in (1024, 512, 384, 256, 128) if p_pad % t == 0]
    for t in cands:
        if batch * (p_pad // t) >= 8:
            return t
    return cands[-1]            # p_pad is a multiple of 128, so 128 is always legal


def local_cnn(x_nchw, params):
    """x_nchw: (B, 512, H, W) f32 or bf16 (output matches input dtype)."""
    w1f, b1f, w2f, b2f = params
    B, C, H, W = x_nchw.shape
    assert C == C_IN
    P = H * W
    P_pad = ((P + 127) // 128) * 128               # lane-dense spatial extent
    io_dtype = x_nchw.dtype if x_nchw.dtype in (jnp.bfloat16, jnp.float32) \
        else jnp.float32

    # NCHW "flatten" is free (contiguous) — no transposes. Zero-pad spatial
    # axis: padded columns produce zero outputs and are sliced off below.
    xr = x_nchw.reshape(B, C, P).astype(io_dtype)
    if P_pad != P:
        xr = jnp.pad(xr, ((0, 0), (0, 0), (0, P_pad - P)))

    TP = _pick_lane_tile(P_pad, B)
    itemsize = jnp.dtype(io_dtype).itemsize
    cost = pl.CostEstimate(
        flops=2 * (MMID * C_IN + M * MMID) * B * P_pad,
        transcendentals=B * P_pad,                                   # one sigmoid / pixel
        bytes_accessed=2 * B * C_IN * P_pad * itemsize               # x in + out
        + (MMID * C_IN + M * MMID) * 2 + MMID * 4 + M * 4,           # weights/biases
    )

    out = pl.pallas_call(
        local_cnn_kernel,
        out_shape=jax.ShapeDtypeStruct((B, C, P_pad), io_dtype),
        grid_spec=pltpu.PrefetchScalarGridSpec(
            num_scalar_prefetch=0,
            grid=(B, P_pad // TP),
            in_specs=[
                pl.BlockSpec((1, C, TP), lambda b, p: (b, 0, p)),     # x tile
                pl.BlockSpec((MMID, C_IN), lambda b, p: (0, 0)),      # fused conv1 weights
                pl.BlockSpec((MMID, 1), lambda b, p: (0, 0)),         # conv1 biases (column)
                pl.BlockSpec((M, MMID), lambda b, p: (0, 0)),         # block-diag conv2 weights
                pl.BlockSpec(memory_space=pltpu.MemorySpace.SMEM),    # conv2 biases (scalars)
            ],
            out_specs=pl.BlockSpec((1, C, TP), lambda b, p: (b, 0, p)),
        ),
        compiler_params=pltpu.CompilerParams(
            dimension_semantics=("parallel", "parallel"),
            vmem_limit_bytes=32 * 1024 * 1024),
        cost_estimate=cost,
    )(xr, w1f, b1f, w2f, b2f)

    if P_pad != P:
        out = out[:, :, :P]
    return out.reshape(B, C, H, W)


local_cnn_jit = jax.jit(local_cnn)


def local_cnn_reference(x_nchw, w1, b1, w2, b2):
    """Plain-JAX f32 reference mirroring the PyTorch forward (sigmoid then max)."""
    B, C, H, W = x_nchw.shape
    xr = x_nchw.reshape(B, C, H * W).astype(jnp.float32)
    attn = None
    for m in range(M):
        h = jnp.maximum(jnp.einsum('jc,bcp->bjp', w1[m], xr) + b1[m][:, None], 0.0)
        s = jax.nn.sigmoid(jnp.einsum('j,bjp->bp', w2[m, 0], h) + b2[m])
        attn = s if attn is None else jnp.maximum(attn, s)
    out = xr * attn[:, None, :]
    return out.reshape(B, C, H, W)


if __name__ == "__main__":
    key = jax.random.PRNGKey(0)
    kx, k1, k2, k3, k4 = jax.random.split(key, 5)

    # Deterministic synthetic parameters (nn.Conv2d layout: (out_ch, in_ch)).
    w1 = (jax.random.uniform(k1, (M, MID, C_IN), jnp.float32, -1.0, 1.0)
          / jnp.sqrt(jnp.float32(C_IN)))
    b1 = (jax.random.uniform(k2, (M, MID), jnp.float32, -1.0, 1.0)
          / jnp.sqrt(jnp.float32(C_IN)))
    w2 = (jax.random.uniform(k3, (M, 1, MID), jnp.float32, -1.0, 1.0)
          / jnp.sqrt(jnp.float32(MID)))
    b2 = (jax.random.uniform(k4, (M,), jnp.float32, -1.0, 1.0)
          / jnp.sqrt(jnp.float32(MID)))

    params = prepare_local_cnn_params(w1, b1, w2, b2)   # once, at "model init"

    # LANet hard-codes C=512; 14x14 is the TransFER-typical feature map and
    # exercises the P -> 256 lane padding path.
    x = jax.random.normal(kx, (2, C_IN, 14, 14), jnp.float32)
    ref = local_cnn_reference(x, w1, b1, w2, b2)

    # f32 I/O path (exact module I/O dtype): error is only bf16-MXU matmul
    # deviation in the attention map, multiplied by |x|.
    out_f32 = jax.block_until_ready(local_cnn_jit(x, params))
    assert out_f32.shape == x.shape
    assert out_f32.dtype == jnp.float32
    assert jnp.allclose(out_f32, ref, atol=3e-2, rtol=3e-2), \
        float(jnp.max(jnp.abs(out_f32 - ref)))

    # bf16 I/O path (recommended fast path: halves HBM traffic of this
    # memory-bound kernel).  Adds bf16 rounding of x and of the output, so the
    # tolerance vs. the pure-f32 reference is loosened accordingly.
    out_bf16 = jax.block_until_ready(local_cnn_jit(x.astype(jnp.bfloat16), params))
    assert out_bf16.shape == x.shape
    assert out_bf16.dtype == jnp.bfloat16
    assert jnp.allclose(out_bf16.astype(jnp.float32), ref, atol=5e-2, rtol=5e-2), \
        float(jnp.max(jnp.abs(out_bf16.astype(jnp.float32) - ref)))

    print("KERNEL_OK")
</pallas_src>

<mosaic_0001>
module attributes {stable_mosaic.version = 11 : i64} {
  func.func @local_cnn_kernel(%arg0: i32, %arg1: i32, %arg2: memref<1x512x128xf32, #tpu.memory_space<vmem>>, %arg3: memref<512x512xbf16, #tpu.memory_space<vmem>>, %arg4: memref<512x1xf32, #tpu.memory_space<vmem>>, %arg5: memref<2x512xbf16, #tpu.memory_space<vmem>>, %arg6: memref<2xf32, #tpu.memory_space<smem>>, %arg7: memref<1x512x128xf32, #tpu.memory_space<vmem>>) attributes {dimension_semantics = [#tpu.dimension_semantics<parallel>, #tpu.dimension_semantics<parallel>], iteration_bounds = array<i64: 2, 2>, scalar_prefetch = 0 : i64, scratch_operands = 0 : i64, tpu.core_type = #tpu.core_type<tc>, window_params = [{transform_indices = @transform_0, window_bounds = array<i64: 1, 512, 128>}, {pipeline_mode = #tpu.pipeline_mode<synchronous>, transform_indices = @transform_1, window_bounds = array<i64: 512, 512>}, {pipeline_mode = #tpu.pipeline_mode<synchronous>, transform_indices = @transform_2, window_bounds = array<i64: 512, 1>}, {pipeline_mode = #tpu.pipeline_mode<synchronous>, transform_indices = @transform_3, window_bounds = array<i64: 2, 512>}, {transform_indices = @transform_4, window_bounds = array<i64: 2>}, {transform_indices = @transform_5, window_bounds = array<i64: 1, 512, 128>}]} {
    %c0 = arith.constant 0 : index
    %c0_0 = arith.constant 0 : index
    %c0_1 = arith.constant 0 : index
    %0 = vector.load %arg2[%c0, %c0_0, %c0_1] : memref<1x512x128xf32, #tpu.memory_space<vmem>>, vector<1x512x128xf32>
    %1 = vector.shape_cast %0 : vector<1x512x128xf32> to vector<512x128xf32>
    %2 = arith.truncf %1 : vector<512x128xf32> to vector<512x128xbf16>
    %c0_2 = arith.constant 0 : index
    %c0_3 = arith.constant 0 : index
    %3 = vector.load %arg3[%c0_2, %c0_3] : memref<512x512xbf16, #tpu.memory_space<vmem>>, vector<512x512xbf16>
    %cst = arith.constant dense<0.000000e+00> : vector<512x128xf32>
    %4 = tpu.matmul %3, %2, %cst {dimension_numbers = #tpu.dot_dimension_numbers<[1], [0], [0], [1], [0, 0, 1, 1], [], []>} : vector<512x512xbf16>, vector<512x128xbf16>, vector<512x128xf32> -> vector<512x128xf32>
    %c0_4 = arith.constant 0 : index
    %c0_5 = arith.constant 0 : index
    %5 = vector.load %arg4[%c0_4, %c0_5] : memref<512x1xf32, #tpu.memory_space<vmem>>, vector<512x1xf32>
    %6 = vector.broadcast %5 : vector<512x1xf32> to vector<512x128xf32>
    %7 = arith.addf %4, %6 : vector<512x128xf32>
    %cst_6 = arith.constant 0.000000e+00 : f32
    %8 = vector.broadcast %cst_6 : f32 to vector<512x128xf32>
    %9 = arith.maximumf %7, %8 : vector<512x128xf32>
    %c0_7 = arith.constant 0 : index
    %c0_8 = arith.constant 0 : index
    %10 = vector.load %arg5[%c0_7, %c0_8] : memref<2x512xbf16, #tpu.memory_space<vmem>>, vector<2x512xbf16>
    %11 = arith.truncf %9 : vector<512x128xf32> to vector<512x128xbf16>
    %cst_9 = arith.constant dense<0.000000e+00> : vector<2x128xf32>
    %12 = tpu.matmul %10, %11, %cst_9 {dimension_numbers = #tpu.dot_dimension_numbers<[1], [0], [0], [1], [0, 0, 1, 1], [], []>} : vector<2x512xbf16>, vector<512x128xbf16>, vector<2x128xf32> -> vector<2x128xf32>
    %13 = vector.extract_strided_slice %12 {offsets = [0, 0], sizes = [1, 128], strides = [1, 1]} : vector<2x128xf32> to vector<1x128xf32>
    %c0_10 = arith.constant 0 : index
    %14 = memref.load %arg6[%c0_10] : memref<2xf32, #tpu.memory_space<smem>>
    %15 = vector.broadcast %14 : f32 to vector<1x128xf32>
    %16 = arith.addf %13, %15 : vector<1x128xf32>
    %17 = vector.extract_strided_slice %12 {offsets = [1, 0], sizes = [1, 128], strides = [1, 1]} : vector<2x128xf32> to vector<1x128xf32>
    %c1 = arith.constant 1 : index
    %18 = memref.load %arg6[%c1] : memref<2xf32, #tpu.memory_space<smem>>
    %19 = vector.broadcast %18 : f32 to vector<1x128xf32>
    %20 = arith.addf %17, %19 : vector<1x128xf32>
    %21 = arith.maximumf %16, %20 : vector<1x128xf32>
    %22 = arith.negf %21 : vector<1x128xf32>
    %23 = math.exp %22 : vector<1x128xf32>
    %cst_11 = arith.constant 1.000000e+00 : f32
    %24 = vector.broadcast %cst_11 : f32 to vector<1x128xf32>
    %25 = arith.addf %24, %23 : vector<1x128xf32>
    %26 = arith.divf %24, %25 : vector<1x128xf32>
    %27 = vector.broadcast %26 : vector<1x128xf32> to vector<512x128xf32>
    %28 = arith.mulf %1, %27 : vector<512x128xf32>
    %c0_12 = arith.constant 0 : index
    %c0_13 = arith.constant 0 : index
    %c0_14 = arith.constant 0 : index
    %29 = vector.load %arg7[%c0_12, %c0_13, %c0_14] : memref<1x512x128xf32, #tpu.memory_space<vmem>>, vector<1x512x128xf32>
    %30 = vector.shape_cast %29 : vector<1x512x128xf32> to vector<512x128xf32>
    %31 = vector.shape_cast %28 : vector<512x128xf32> to vector<1x512x128xf32>
    tpu.vector_store %arg7[%c0_12, %c0_13, %c0_14], %31 {strides = array<i32>} : memref<1x512x128xf32, #tpu.memory_space<vmem>>, vector<1x512x128xf32>,
    return
  }
  func.func @transform_0(%arg0: i32, %arg1: i32) -> (i32, i32, i32) {
    %c0_i32 = arith.constant 0 : i32
    %c0_i32_0 = arith.constant 0 : i32
    return %arg0, %c0_i32, %arg1 : i32, i32, i32
  }
  func.func @transform_1(%arg0: i32, %arg1: i32) -> (i32, i32) {
    %c0_i32 = arith.constant 0 : i32
    %c0_i32_0 = arith.constant 0 : i32
    %c0_i32_1 = arith.constant 0 : i32
    return %c0_i32, %c0_i32_0 : i32, i32
  }
  func.func @transform_2(%arg0: i32, %arg1: i32) -> (i32, i32) {
    %c0_i32 = arith.constant 0 : i32
    %c0_i32_0 = arith.constant 0 : i32
    %c0_i32_1 = arith.constant 0 : i32
    return %c0_i32, %c0_i32_0 : i32, i32
  }
  func.func @transform_3(%arg0: i32, %arg1: i32) -> (i32, i32) {
    %c0_i32 = arith.constant 0 : i32
    %c0_i32_0 = arith.constant 0 : i32
    %c0_i32_1 = arith.constant 0 : i32
    return %c0_i32, %c0_i32_0 : i32, i32
  }
  func.func @transform_4(%arg0: i32, %arg1: i32) -> i32 {
    %c0_i32 = arith.constant 0 : i32
    %c0_i32_0 = arith.constant 0 : i32
    return %c0_i32 : i32
  }
  func.func @transform_5(%arg0: i32, %arg1: i32) -> (i32, i32, i32) {
    %c0_i32 = arith.constant 0 : i32
    %c0_i32_0 = arith.constant 0 : i32
    return %arg0, %c0_i32, %arg1 : i32, i32, i32
  }
}

</mosaic_0001>

<bundles_post_ra>
// kernel: local_cnn.1
= control target key start
LH: loop header
LB: loop body
LE: loop exit
PB: predicated region body
PF: predicated region fallthrough
CT: control target
= control target key end

     0   :  { %10 = vsyncpa [#allocation4], 0  ;;  %s3730_s18 = smov 0   ;;  %s3732_s19 = smov 0   ;;  %s5291_s0 = inlined_call_operand.vmem [shape: f32[2,512,256], index: 0, kind: input, shape index: {}]   ;;  %s5292_s1 = inlined_call_operand.vmem [shape: bf16[512,512], index: 1, kind: input, shape index: {}]   ;;  %s5293_s2 = inlined_call_operand.vmem [shape: f32[512,1], index: 2, kind: input, shape index: {}]   ;;  %s5294_s3 = inlined_call_operand.vmem [shape: bf16[2,512], index: 3, kind: input, shape index: {}]   ;;  %s5295_s4 = inlined_call_operand.vmem [shape: f32[2], index: 4, kind: input, shape index: {}]   ;;  %s5296_s5 = inlined_call_operand.vmem [shape: f32[2,512,256], index: 5, kind: output, shape index: {}]  }
   0x1   :  { %s3734_s20 = smov 0   ;;  %s3736_s21 = smov 0  }
   0x2   :  { %s3738_s22 = smov 0   ;;  %s3740_s23 = smov 0  }
   0x3   :  { %s3742_s24 = smov 0  }
   0x4 LB: > { %s3099_s25 = sadd.s32 4294967295, %s3695_s24   ;;  %s25_s26 = sadd.s32 1, %s3687_s22  ;;  %s3695_s24 = sphi %s3742_s24, %s16_s24   ;;  %s3691_s23 = sphi %s3740_s23, %s5351_s23   ;;  %s3687_s22 = sphi %s3738_s22, %s5350_s22   ;;  %s3683_s21 = sphi %s3736_s21, %s5349_s21   ;;  %s3679_s20 = sphi %s3734_s20, %s5348_s20   ;;  %s3675_s19 = sphi %s3732_s19, %s5347_s19   ;;  %s3671_s18 = sphi %s3730_s18, %s5346_s18  }
   0x5   : > { %p26_p0 = scmp.ge.s32.totalorder %s25_s26, 2  ;;  %s28_s27 = sadd.s32 1, %s3691_s23 }
   0x6   : > { %s37_s28 = sadd.s32 1, %s3675_s19  ;;  %p44_p1 = scmp.ne.s32.totalorder %s3675_s19, %s3671_s18 }
   0x7   : > { %s5353_s26 = smov (%p26_p0, %s25_s26), 0  ;;  %s5355_s27 = smov (!%p26_p0, %s28_s27), %s3691_s23 }
   0x8   : > { %s33_s29 = ssub.s32 %s3687_s22, %s5353_s26  ;;  %p45_p2 = scmp.eq.s32.totalorder %s3695_s24, 0 }
   0x9   : > { %p30_p3 = scmp.ge.s32.totalorder %s5355_s27, 2  ;;  %p160_p4 = scmp.eq.s32.totalorder %s3099_s25, 3 }
   0xa   : > { %p3777_p5 = por %p45_p2, %p44_p1  ;;  %p3101_p6 = scmp.ge.s32.totalorder %s3695_s24, 1 }
   0xb   : > { %s5357_s27 = smov (%p30_p3, %s5355_s27), 0  ;;  %p3784_p7 = por %p160_p4, %p44_p1 }
   0xc   : > { %p173_p8 = scmp.lt.s32.totalorder %s3695_s24, 5  ;;  %s32_s7 = ssub.s32 %s3691_s23, %s5357_s27 }
   0xd   : > { %s5299_s6 = scalar_select %p3784_p7, 1, 0 }
   0xe   : > { %s34_s8 = sor.u32 %s33_s29, %s32_s7  ;;  %p3791_p9 = pnand %p3101_p6, %p173_p8 }
   0xf   : > { %p35_p10 = scmp.eq.s32.totalorder %s34_s8, 0  ;;  %p3795_p11 = scmp.eq.s32.totalorder %s3099_s25, 0 }
  0x10   : > { %s5300_s9 = scalar_select %p3791_p9, 1, 0 }
  0x11   : > { %p3295_p12 = pneg %p3791_p9  ;;  %s195_s13 = sshll.u32 %s5295_s4, 4  ;;  %s196_s13 = int_to_ptr.vmem [resolvable:$true] %s195_s13 }
  0x12   : > { %s3805_s14 = scalar_select %p35_p10, %s3675_s19, %s37_s28  }
  0x13   : > { %p3296_p13 = pnand %p3795_p11, %p3295_p12  ;;  %s3622_s15 = scalar_lea.vmem %s196_s13, 16 }
  0x14   : > { %p3623_p0 = scmp.ne.s32.totalorder %s196_s13, %s3622_s15  ;;  %p3630_p4 = scmp.lt.s32.totalorder %s196_s13, %s196_s13 }
  0x15   : > { %p3624_p1 = pneg %p3296_p13  ;;  %p3631_p6 = scmp.lt.s32.totalorder %s3622_s15, %s3622_s15 }
  0x17   : > { %p3625_p2 = pnand %p3624_p1, %p3623_p0  ;;  %p3632_p8 = por %p3631_p6, %p3630_p4 }
  0x19   : > { %p3626_p3 = pneg %p3625_p2 }
  0x1b   : > { %p3633_p7 = pnand %p3632_p8, %p3626_p3 }
  0x1d   : > { %3636 = shalt.err (!%p3633_p7)
}
  0x1e   : > { %s3697_s16 = smov [#allocation3]   ;;  %p3103_p9 = scmp.ge.s32.totalorder %s3695_s24, 4 }
  0x1f   : > { %3298 = dma.vmem_to_smem (!%p3296_p13), %s196_s13, 16, %s3697_s16, [#allocation4]  }
  0x20   : > { %202 = sbr.rel (%p3103_p9) target bundleno = 75 (0x4b), region = 32 }
  0x25   : > { %205 = sbr.rel (!%p3777_p5) target bundleno = 75 (0x4b), region = 36  ;;  %s207_s17 = sand.u32 (%p3777_p5), 1, %s3675_s19  }
  0x26   : > { %s3105_s25 = sshll.u32 (%p3777_p5), %s3691_s23, 7  ;;  %s3104_s28 = sshll.u32 (%p3777_p5), %s207_s17, 9 }
  0x27   : > { %s211_s29 = sadd.s32 (%p3777_p5), %s3687_s22, %s3105_s25  ;;  %s3823_s30 = scalar_lea.vmem (%p3777_p5), [#allocation2], %s3104_s28 }
  0x28   : > { %s3106_s7 = sshll.u32 (%p3777_p5), %s211_s29, 3 }
  0x29   : > { %s3818_s12 = scalar_lea.vmem (%p3777_p5), %s5291_s0, %s3106_s7 }
  0x2a   : > { %v368_v0 = vld [vmem:[%s3818_s12] sm:$0xff]  ;;  %v370_v1 = vld [vmem:[%s3818_s12 + $0x10] sm:$0xff] }
  0x2b   : > { %v372_v2 = vld [vmem:[%s3818_s12 + $0x20] sm:$0xff]  ;;  %369 = vst [vmem:[%s3823_s30] sm:$0xff] %v368_v0  ;;  %371 = vst [vmem:[%s3823_s30 + $0x8] sm:$0xff] %v370_v1  ;;  %v374_v3 = vld [vmem:[%s3818_s12 + $0x30] sm:$0xff] }
  0x2c   : > { %373 = vst [vmem:[%s3823_s30 + $0x10] sm:$0xff] %v372_v2  ;;  %v376_v4 = vld [vmem:[%s3818_s12 + $0x40] sm:$0xff]  ;;  %v378_v5 = vld [vmem:[%s3818_s12 + $0x50] sm:$0xff]  ;;  %375 = vst [vmem:[%s3823_s30 + $0x18] sm:$0xff] %v374_v3 }
  0x2d   : > { %377 = vst [vmem:[%s3823_s30 + $0x20] sm:$0xff] %v376_v4  ;;  %379 = vst [vmem:[%s3823_s30 + $0x28] sm:$0xff] %v378_v5  ;;  %v380_v6 = vld [vmem:[%s3818_s12 + $0x60] sm:$0xff]  ;;  %v382_v7 = vld [vmem:[%s3818_s12 + $0x70] sm:$0xff] }
  0x2e   : > { %v384_v8 = vld [vmem:[%s3818_s12 + $0x80] sm:$0xff]  ;;  %381 = vst [vmem:[%s3823_s30 + $0x30] sm:$0xff] %v380_v6  ;;  %383 = vst [vmem:[%s3823_s30 + $0x38] sm:$0xff] %v382_v7  ;;  %v386_v9 = vld [vmem:[%s3818_s12 + $0x90] sm:$0xff] }
  0x2f   : > { %385 = vst [vmem:[%s3823_s30 + $0x40] sm:$0xff] %v384_v8  ;;  %v388_v10 = vld [vmem:[%s3818_s12 + $0xa0] sm:$0xff]  ;;  %v390_v11 = vld [vmem:[%s3818_s12 + $0xb0] sm:$0xff]  ;;  %387 = vst [vmem:[%s3823_s30 + $0x48] sm:$0xff] %v386_v9 }
  0x30   : > { %389 = vst [vmem:[%s3823_s30 + $0x50] sm:$0xff] %v388_v10  ;;  %391 = vst [vmem:[%s3823_s30 + $0x58] sm:$0xff] %v390_v11  ;;  %v392_v12 = vld [vmem:[%s3818_s12 + $0xc0] sm:$0xff]  ;;  %v394_v13 = vld [vmem:[%s3818_s12 + $0xd0] sm:$0xff] }
  0x31   : > { %v396_v14 = vld [vmem:[%s3818_s12 + $0xe0] sm:$0xff]  ;;  %393 = vst [vmem:[%s3823_s30 + $0x60] sm:$0xff] %v392_v12  ;;  %395 = vst [vmem:[%s3823_s30 + $0x68] sm:$0xff] %v394_v13  ;;  %v398_v15 = vld [vmem:[%s3818_s12 + $0xf0] sm:$0xff] }
  0x32   : > { %397 = vst [vmem:[%s3823_s30 + $0x70] sm:$0xff] %v396_v14  ;;  %v400_v16 = vld [vmem:[%s3818_s12 + $0x100] sm:$0xff]  ;;  %v402_v17 = vld [vmem:[%s3818_s12 + $0x110] sm:$0xff]  ;;  %399 = vst [vmem:[%s3823_s30 + $0x78] sm:$0xff] %v398_v15 }
  0x33   : > { %401 = vst [vmem:[%s3823_s30 + $0x80] sm:$0xff] %v400_v16  ;;  %403 = vst [vmem:[%s3823_s30 + $0x88] sm:$0xff] %v402_v17  ;;  %v404_v18 = vld [vmem:[%s3818_s12 + $0x120] sm:$0xff]  ;;  %v406_v19 = vld [vmem:[%s3818_s12 + $0x130] sm:$0xff] }
  0x34   : > { %v408_v20 = vld [vmem:[%s3818_s12 + $0x140] sm:$0xff]  ;;  %405 = vst [vmem:[%s3823_s30 + $0x90] sm:$0xff] %v404_v18  ;;  %407 = vst [vmem:[%s3823_s30 + $0x98] sm:$0xff] %v406_v19  ;;  %v410_v21 = vld [vmem:[%s3818_s12 + $0x150] sm:$0xff] }
  0x35   : > { %409 = vst [vmem:[%s3823_s30 + $0xa0] sm:$0xff] %v408_v20  ;;  %v412_v22 = vld [vmem:[%s3818_s12 + $0x160] sm:$0xff]  ;;  %v414_v23 = vld [vmem:[%s3818_s12 + $0x170] sm:$0xff]  ;;  %411 = vst [vmem:[%s3823_s30 + $0xa8] sm:$0xff] %v410_v21 }
  0x36   : > { %413 = vst [vmem:[%s3823_s30 + $0xb0] sm:$0xff] %v412_v22  ;;  %415 = vst [vmem:[%s3823_s30 + $0xb8] sm:$0xff] %v414_v23  ;;  %v416_v24 = vld [vmem:[%s3818_s12 + $0x180] sm:$0xff]  ;;  %v418_v25 = vld [vmem:[%s3818_s12 + $0x190] sm:$0xff] }
  0x37   : > { %v420_v26 = vld [vmem:[%s3818_s12 + $0x1a0] sm:$0xff]  ;;  %417 = vst [vmem:[%s3823_s30 + $0xc0] sm:$0xff] %v416_v24  ;;  %419 = vst [vmem:[%s3823_s30 + $0xc8] sm:$0xff] %v418_v25  ;;  %v422_v27 = vld [vmem:[%s3818_s12 + $0x1b0] sm:$0xff] }
  0x38   : > { %421 = vst [vmem:[%s3823_s30 + $0xd0] sm:$0xff] %v420_v26  ;;  %v424_v28 = vld [vmem:[%s3818_s12 + $0x1c0] sm:$0xff]  ;;  %v426_v29 = vld [vmem:[%s3818_s12 + $0x1d0] sm:$0xff]  ;;  %423 = vst [vmem:[%s3823_s30 + $0xd8] sm:$0xff] %v422_v27 }
  0x39   : > { %425 = vst [vmem:[%s3823_s30 + $0xe0] sm:$0xff] %v424_v28  ;;  %427 = vst [vmem:[%s3823_s30 + $0xe8] sm:$0xff] %v426_v29  ;;  %v428_v30 = vld [vmem:[%s3818_s12 + $0x1e0] sm:$0xff]  ;;  %v430_v31 = vld [vmem:[%s3818_s12 + $0x1f0] sm:$0xff] }
  0x3a   : > { %v432_v32 = vld [vmem:[%s3818_s12 + $0x200] sm:$0xff]  ;;  %429 = vst [vmem:[%s3823_s30 + $0xf0] sm:$0xff] %v428_v30  ;;  %431 = vst [vmem:[%s3823_s30 + $0xf8] sm:$0xff] %v430_v31  ;;  %v434_v33 = vld [vmem:[%s3818_s12 + $0x210] sm:$0xff] }
  0x3b   : > { %433 = vst [vmem:[%s3823_s30 + $0x100] sm:$0xff] %v432_v32  ;;  %v436_v34 = vld [vmem:[%s3818_s12 + $0x220] sm:$0xff]  ;;  %v438_v35 = vld [vmem:[%s3818_s12 + $0x230] sm:$0xff]  ;;  %435 = vst [vmem:[%s3823_s30 + $0x108] sm:$0xff] %v434_v33 }
  0x3c   : > { %437 = vst [vmem:[%s3823_s30 + $0x110] sm:$0xff] %v436_v34  ;;  %439 = vst [vmem:[%s3823_s30 + $0x118] sm:$0xff] %v438_v35  ;;  %v440_v36 = vld [vmem:[%s3818_s12 + $0x240] sm:$0xff]  ;;  %v442_v37 = vld [vmem:[%s3818_s12 + $0x250] sm:$0xff] }
  0x3d   : > { %v444_v38 = vld [vmem:[%s3818_s12 + $0x260] sm:$0xff]  ;;  %441 = vst [vmem:[%s3823_s30 + $0x120] sm:$0xff] %v440_v36  ;;  %443 = vst [vmem:[%s3823_s30 + $0x128] sm:$0xff] %v442_v37  ;;  %v446_v39 = vld [vmem:[%s3818_s12 + $0x270] sm:$0xff] }
  0x3e   : > { %445 = vst [vmem:[%s3823_s30 + $0x130] sm:$0xff] %v444_v38  ;;  %v448_v40 = vld [vmem:[%s3818_s12 + $0x280] sm:$0xff]  ;;  %v450_v41 = vld [vmem:[%s3818_s12 + $0x290] sm:$0xff]  ;;  %447 = vst [vmem:[%s3823_s30 + $0x138] sm:$0xff] %v446_v39 }
  0x3f   : > { %449 = vst [vmem:[%s3823_s30 + $0x140] sm:$0xff] %v448_v40  ;;  %451 = vst [vmem:[%s3823_s30 + $0x148] sm:$0xff] %v450_v41  ;;  %v452_v42 = vld [vmem:[%s3818_s12 + $0x2a0] sm:$0xff]  ;;  %v454_v43 = vld [vmem:[%s3818_s12 + $0x2b0] sm:$0xff] }
  0x40   : > { %v456_v44 = vld [vmem:[%s3818_s12 + $0x2c0] sm:$0xff]  ;;  %453 = vst [vmem:[%s3823_s30 + $0x150] sm:$0xff] %v452_v42  ;;  %455 = vst [vmem:[%s3823_s30 + $0x158] sm:$0xff] %v454_v43  ;;  %v458_v45 = vld [vmem:[%s3818_s12 + $0x2d0] sm:$0xff] }
  0x41   : > { %457 = vst [vmem:[%s3823_s30 + $0x160] sm:$0xff] %v456_v44  ;;  %v460_v46 = vld [vmem:[%s3818_s12 + $0x2e0] sm:$0xff]  ;;  %v462_v47 = vld [vmem:[%s3818_s12 + $0x2f0] sm:$0xff]  ;;  %459 = vst [vmem:[%s3823_s30 + $0x168] sm:$0xff] %v458_v45 }
  0x42   : > { %461 = vst [vmem:[%s3823_s30 + $0x170] sm:$0xff] %v460_v46  ;;  %463 = vst [vmem:[%s3823_s30 + $0x178] sm:$0xff] %v462_v47  ;;  %v464_v48 = vld [vmem:[%s3818_s12 + $0x300] sm:$0xff]  ;;  %v466_v49 = vld [vmem:[%s3818_s12 + $0x310] sm:$0xff] }
  0x43   : > { %v468_v50 = vld [vmem:[%s3818_s12 + $0x320] sm:$0xff]  ;;  %465 = vst [vmem:[%s3823_s30 + $0x180] sm:$0xff] %v464_v48  ;;  %467 = vst [vmem:[%s3823_s30 + $0x188] sm:$0xff] %v466_v49  ;;  %v470_v51 = vld [vmem:[%s3818_s12 + $0x330] sm:$0xff] }
  0x44   : > { %469 = vst [vmem:[%s3823_s30 + $0x190] sm:$0xff] %v468_v50  ;;  %v472_v52 = vld [vmem:[%s3818_s12 + $0x340] sm:$0xff]  ;;  %v474_v53 = vld [vmem:[%s3818_s12 + $0x350] sm:$0xff]  ;;  %471 = vst [vmem:[%s3823_s30 + $0x198] sm:$0xff] %v470_v51 }
  0x45   : > { %473 = vst [vmem:[%s3823_s30 + $0x1a0] sm:$0xff] %v472_v52  ;;  %475 = vst [vmem:[%s3823_s30 + $0x1a8] sm:$0xff] %v474_v53  ;;  %v476_v54 = vld [vmem:[%s3818_s12 + $0x360] sm:$0xff]  ;;  %v478_v55 = vld [vmem:[%s3818_s12 + $0x370] sm:$0xff] }
  0x46   : > { %v480_v56 = vld [vmem:[%s3818_s12 + $0x380] sm:$0xff]  ;;  %477 = vst [vmem:[%s3823_s30 + $0x1b0] sm:$0xff] %v476_v54  ;;  %479 = vst [vmem:[%s3823_s30 + $0x1b8] sm:$0xff] %v478_v55  ;;  %v482_v57 = vld [vmem:[%s3818_s12 + $0x390] sm:$0xff] }
  0x47   : > { %481 = vst [vmem:[%s3823_s30 + $0x1c0] sm:$0xff] %v480_v56  ;;  %v484_v58 = vld [vmem:[%s3818_s12 + $0x3a0] sm:$0xff]  ;;  %v486_v59 = vld [vmem:[%s3818_s12 + $0x3b0] sm:$0xff]  ;;  %483 = vst [vmem:[%s3823_s30 + $0x1c8] sm:$0xff] %v482_v57 }
  0x48   : > { %485 = vst [vmem:[%s3823_s30 + $0x1d0] sm:$0xff] %v484_v58  ;;  %487 = vst [vmem:[%s3823_s30 + $0x1d8] sm:$0xff] %v486_v59  ;;  %v488_v60 = vld [vmem:[%s3818_s12 + $0x3c0] sm:$0xff]  ;;  %v490_v61 = vld [vmem:[%s3818_s12 + $0x3d0] sm:$0xff] }
  0x49   : > { %v492_v62 = vld [vmem:[%s3818_s12 + $0x3e0] sm:$0xff]  ;;  %489 = vst [vmem:[%s3823_s30 + $0x1e0] sm:$0xff] %v488_v60  ;;  %491 = vst [vmem:[%s3823_s30 + $0x1e8] sm:$0xff] %v490_v61  ;;  %v494_v63 = vld [vmem:[%s3818_s12 + $0x3f0] sm:$0xff] }
  0x4a   : > { %493 = vst [vmem:[%s3823_s30 + $0x1f0] sm:$0xff] %v492_v62  ;;  %495 = vst [vmem:[%s3823_s30 + $0x1f8] sm:$0xff] %v494_v63 }
  0x4b PF: > { %p5302_p5 = scmp.ne.s32.totalorder %s5300_s9, 0 }
  0x4d   : > { %504 = sbr.rel (%p5302_p5) target bundleno = 945 (0x3b1), region = 74 }
  0x52   : > { %s507_s13 = sand.u32 1, %s3671_s18  }
  0x53   : > { %s3953_s15 = sshll.u32 %s507_s13, 9 }
  0x54   : > { %s3956_s16 = scalar_lea.vmem [#allocation2], %s3953_s15 }
  0x55   : > { %3666 = dma.done.wait (%p3795_p11), [#allocation4], 16  }
  0x56   : > { %3668 = vsyncadd (%p3795_p11), [#allocation4], 4294967280 }
  0x57   : > { %517 = sfence }
  0x58   : > { %v553_v0 = vld [vmem:[%s3956_s16 + $0x70] sm:$0xff]  ;;  %v554_v1 = vld [vmem:[%s3956_s16 + $0x78] sm:$0xff]  ;;  %v3698_v3 = vmov 0   ;;  %v551_v6 = vld [vmem:[%s3956_s16 + $0x60] sm:$0xff]  ;;  %s3240_s11 = sld [smem:[#allocation3 + $0x1]]  ;;  %s4963_s30 = scalar_lea.vmem [#allocation5], %s3953_s15 }
  0x59   : > { %v585_v2 = vld [vmem:[%s3956_s16 + $0x170] sm:$0xff]  ;;  %1787 = vmatprep.subr.bf16.mxu0 %v3698_v3  ;;  %2076 = vmatprep.subr.bf16.mxu1 %v3698_v3  ;;  %v610_v4 = vpack.c.bf16 %v554_v1, %v553_v0  ;;  %v586_v5 = vld [vmem:[%s3956_s16 + $0x178] sm:$0xff]  ;;  %v552_v7 = vld [vmem:[%s3956_s16 + $0x68] sm:$0xff]  ;;  %s2571_s12 = sld [smem:[#allocation3]]  ;;  %p5345_p7 = scmp.ne.s32.totalorder %s5299_s6, 0 }
  0x5a   : > { %v626_v8 = vpack.c.bf16 %v586_v5, %v585_v2  ;;  %v583_v9 = vld [vmem:[%s3956_s16 + $0x160] sm:$0xff]  ;;  %v584_v10 = vld [vmem:[%s3956_s16 + $0x168] sm:$0xff]  ;;  %3360 = vset.pattern.permute.xlu0 %v3698_v3  ;;  %3361 = vset.pattern.permute.xlu1 %v3698_v3  ;;  %v609_v11 = vpack.c.bf16 %v552_v7, %v551_v6  ;;  %v549_v13 = vld [vmem:[%s3956_s16 + $0x50] sm:$0xff]  ;;  %s3243_s15 = sshll.u32 (%p5345_p7), %s3683_s21, 7 }
  0x5b   : > { %1788 = vmatpush1.bf16.msra.mxu0 %v610_v4  ;;  %v625_v12 = vpack.c.bf16 %v584_v10, %v583_v9  ;;  %v550_v14 = vld [vmem:[%s3956_s16 + $0x58] sm:$0xff]  ;;  %v793_v15 = vld [vmem:[%s5293_s2 + $0xf0] sm:$0xff]  ;;  %v547_v23 = vld [vmem:[%s3956_s16 + $0x40] sm:$0xff]  ;;  %s2727_s6 = sadd.s32 (%p5345_p7), %s3679_s20, %s3243_s15 }
  0x5c   : > { %2077 = vmatpush1.bf16.msra.mxu1 %v626_v8  ;;  %1789 = vmatprep.subr.bf16.mxu0 %v3698_v3  ;;  %v581_v16 = vld [vmem:[%s3956_s16 + $0x150] sm:$0xff]  ;;  %v582_v17 = vld [vmem:[%s3956_s16 + $0x158] sm:$0xff]  ;;  %v608_v20 = vpack.c.bf16 %v550_v14, %v549_v13  ;;  %v548_v24 = vld [vmem:[%s3956_s16 + $0x48] sm:$0xff] }
  0x5d   : > { %2078 = vmatprep.subr.bf16.mxu1 %v3698_v3  ;;  %979 = vperm.xlu0 %3360, %v793_v15   ;;  %v825_v18 = vld [vmem:[%s5293_s2 + $0x1f0] sm:$0xff]  ;;  %v794_v19 = vld [vmem:[%s5293_s2 + $0xf8] sm:$0xff]  ;;  %v624_v22 = vpack.c.bf16 %v582_v17, %v581_v16  ;;  %v579_v25 = vld [vmem:[%s3956_s16 + $0x140] sm:$0xff]  ;;  %v607_v28 = vpack.c.bf16 %v548_v24, %v547_v23 }
  0x5e   : > { %1139 = vperm.xlu1 %3361, %v825_v18   ;;  %v826_v21 = vld [vmem:[%s5293_s2 + $0x1f8] sm:$0xff]  ;;  %v580_v26 = vld [vmem:[%s3956_s16 + $0x148] sm:$0xff]  ;;  %v777_v27 = vld [vmem:[%s5293_s2 + $0x70] sm:$0xff] }
  0x5f   : > { %1790 = vmatpush1.bf16.msra.mxu0 %v609_v11  ;;  %v778_v29 = vld [vmem:[%s5293_s2 + $0x78] sm:$0xff]  ;;  %v623_v30 = vpack.c.bf16 %v580_v26, %v579_v25  ;;  %v545_v31 = vld [vmem:[%s3956_s16 + $0x30] sm:$0xff]  ;;  %v543_v39 = vld [vmem:[%s3956_s16 + $0x20] sm:$0xff] }
  0x60   : > { %2079 = vmatpush1.bf16.msra.mxu1 %v625_v12  ;;  %1791 = vmatprep.subr.bf16.mxu0 %v3698_v3  ;;  %v546_v32 = vld [vmem:[%s3956_s16 + $0x38] sm:$0xff]  ;;  %v577_v33 = vld [vmem:[%s3956_s16 + $0x130] sm:$0xff]  ;;  %v544_v40 = vld [vmem:[%s3956_s16 + $0x28] sm:$0xff] }
  0x61   : > { %2080 = vmatprep.subr.bf16.mxu1 %v3698_v3  ;;  %984 = vperm.xlu0 %3360, %v794_v19   ;;  %v578_v34 = vld [vmem:[%s3956_s16 + $0x138] sm:$0xff]  ;;  %v809_v35 = vld [vmem:[%s5293_s2 + $0x170] sm:$0xff]  ;;  %v606_v36 = vpack.c.bf16 %v546_v32, %v545_v31  ;;  %v575_v41 = vld [vmem:[%s3956_s16 + $0x120] sm:$0xff]  ;;  %v605_v44 = vpack.c.bf16 %v544_v40, %v543_v39 }
  0x62   : > { %1144 = vperm.xlu1 %3361, %v826_v21   ;;  %v810_v37 = vld [vmem:[%s5293_s2 + $0x178] sm:$0xff]  ;;  %v622_v38 = vpack.c.bf16 %v578_v34, %v577_v33  ;;  %v576_v42 = vld [vmem:[%s3956_s16 + $0x128] sm:$0xff]  ;;  %v791_v43 = vld [vmem:[%s5293_s2 + $0xe0] sm:$0xff] }
  0x63   : > { %1792 = vmatpush1.bf16.msra.mxu0 %v608_v20  ;;  %v792_v45 = vld [vmem:[%s5293_s2 + $0xe8] sm:$0xff]  ;;  %v621_v46 = vpack.c.bf16 %v576_v42, %v575_v41  ;;  %v541_v47 = vld [vmem:[%s3956_s16 + $0x10] sm:$0xff]  ;;  %v542_v48 = vld [vmem:[%s3956_s16 + $0x18] sm:$0xff] }
  0x64   : > { %2081 = vmatpush1.bf16.msra.mxu1 %v624_v22  ;;  %1793 = vmatprep.subr.bf16.mxu0 %v3698_v3  ;;  %v573_v49 = vld [vmem:[%s3956_s16 + $0x110] sm:$0xff]  ;;  %v574_v50 = vld [vmem:[%s3956_s16 + $0x118] sm:$0xff]  ;;  %v823_v51 = vld [vmem:[%s5293_s2 + $0x1e0] sm:$0xff]  ;;  %v604_v52 = vpack.c.bf16 %v542_v48, %v541_v47 }
  0x65   : > { %2082 = vmatprep.subr.bf16.mxu1 %v3698_v3  ;;  %899 = vperm.xlu0 %3360, %v777_v27   ;;  %v824_v53 = vld [vmem:[%s5293_s2 + $0x1e8] sm:$0xff]  ;;  %v620_v54 = vpack.c.bf16 %v574_v50, %v573_v49  ;;  %v539_v55 = vld [vmem:[%s3956_s16] sm:$0xff]  ;;  %v569_v63 = vld [vmem:[%s3956_s16 + $0xf0] sm:$0xff] }
  0x66   : > { %904 = vperm.xlu1 %3361, %v778_v29   ;;  %v540_v56 = vld [vmem:[%s3956_s16 + $0x8] sm:$0xff]  ;;  %v571_v57 = vld [vmem:[%s3956_s16 + $0x100] sm:$0xff]  ;;  %v570_v0 = vld [vmem:[%s3956_s16 + $0xf8] sm:$0xff] }
  0x67   : > { %1794 = vmatpush1.bf16.msra.mxu0 %v607_v28  ;;  %v572_v58 = vld [vmem:[%s3956_s16 + $0x108] sm:$0xff]  ;;  %v775_v59 = vld [vmem:[%s5293_s2 + $0x60] sm:$0xff]  ;;  %v603_v60 = vpack.c.bf16 %v540_v56, %v539_v55  ;;  %v601_v1 = vld [vmem:[%s3956_s16 + $0x1f0] sm:$0xff]  ;;  %v618_v6 = vpack.c.bf16 %v570_v0, %v569_v63 }
  0x68   : > { %2083 = vmatpush1.bf16.msra.mxu1 %v623_v30  ;;  %1795 = vmatprep.subr.bf16.mxu0 %v3698_v3  ;;  %v776_v61 = vld [vmem:[%s5293_s2 + $0x68] sm:$0xff]  ;;  %v619_v62 = vpack.c.bf16 %v572_v58, %v571_v57  ;;  %v602_v2 = vld [vmem:[%s3956_s16 + $0x1f8] sm:$0xff]  ;;  %v807_v4 = vld [vmem:[%s5293_s2 + $0x160] sm:$0xff] }
  0x69   : > { %2084 = vmatprep.subr.bf16.mxu1 %v3698_v3  ;;  %1059 = vperm.xlu0 %3360, %v809_v35   ;;  %v3364_v5 = vld [vmem:[%s5292_s1 + $0x4] ss:$16 sps:$4 sm:$0xff]   ;;  %v808_v7 = vld [vmem:[%s5293_s2 + $0x168] sm:$0xff]  ;;  %v634_v8 = vpack.c.bf16 %v602_v2, %v601_v1  ;;  %v790_v16 = vld [vmem:[%s5293_s2 + $0xd8] sm:$0xff] }
  0x6a   : > { %1064 = vperm.xlu1 %3361, %v810_v37   ;;  %v567_v9 = vld [vmem:[%s3956_s16 + $0xe0] sm:$0xff]  ;;  %v568_v10 = vld [vmem:[%s3956_s16 + $0xe8] sm:$0xff]  ;;  %v789_v14 = vld [vmem:[%s5293_s2 + $0xd0] sm:$0xff]  ;;  %1819 = vmatprep.mubr.bf16.mxu0 %v3364_v5 }
  0x6b   : > { %1796 = vmatpush1.bf16.msra.mxu0 %v606_v36  ;;  %v3367_v11 = vld [vmem:[%s5292_s1 + $0xc] ss:$16 sps:$4 sm:$0xff]   ;;  %v599_v12 = vld [vmem:[%s3956_s16 + $0x1e0] sm:$0xff]  ;;  %v617_v15 = vpack.c.bf16 %v568_v10, %v567_v9  ;;  %v565_v18 = vld [vmem:[%s3956_s16 + $0xd0] sm:$0xff] }
  0x6c   : > { %2085 = vmatpush1.bf16.msra.mxu1 %v622_v38  ;;  %1797 = vmatprep.subr.bf16.mxu0 %v3698_v3  ;;  %v600_v13 = vld [vmem:[%s3956_s16 + $0x1e8] sm:$0xff]  ;;  %v566_v19 = vld [vmem:[%s3956_s16 + $0xd8] sm:$0xff]  ;;  %v597_v20 = vld [vmem:[%s3956_s16 + $0x1d0] sm:$0xff] }
  0x6d   : > { %2086 = vmatprep.subr.bf16.mxu1 %v3698_v3  ;;  %969 = vperm.xlu0 %3360, %v791_v43   ;;  %v633_v17 = vpack.c.bf16 %v600_v13, %v599_v12  ;;  %v598_v21 = vld [vmem:[%s3956_s16 + $0x1d8] sm:$0xff]  ;;  %v821_v22 = vld [vmem:[%s5293_s2 + $0x1d0] sm:$0xff]  ;;  %v616_v23 = vpack.c.bf16 %v566_v19, %v565_v18  ;;  %v563_v26 = vld [vmem:[%s3956_s16 + $0xc0] sm:$0xff] }
  0x6e   : > { %974 = vperm.xlu1 %3361, %v792_v45   ;;  %2108 = vmatprep.mubr.bf16.mxu1 %v3367_v11  ;;  %v822_v24 = vld [vmem:[%s5293_s2 + $0x1d8] sm:$0xff]  ;;  %v632_v25 = vpack.c.bf16 %v598_v21, %v597_v20  ;;  %v564_v27 = vld [vmem:[%s3956_s16 + $0xc8] sm:$0xff]  ;;  %v595_v28 = vld [vmem:[%s3956_s16 + $0x1c0] sm:$0xff] }
  0x6f   : > { %1798 = vmatpush1.bf16.msra.mxu0 %v605_v44  ;;  %v596_v29 = vld [vmem:[%s3956_s16 + $0x1c8] sm:$0xff]  ;;  %v773_v30 = vld [vmem:[%s5293_s2 + $0x50] sm:$0xff]  ;;  %v615_v31 = vpack.c.bf16 %v564_v27, %v563_v26  ;;  %v774_v32 = vld [vmem:[%s5293_s2 + $0x58] sm:$0xff] }
  0x70   : > { %2087 = vmatpush1.bf16.msra.mxu1 %v621_v46  ;;  %1799 = vmatprep.subr.bf16.mxu0 %v3698_v3  ;;  %v631_v33 = vpack.c.bf16 %v596_v29, %v595_v28  ;;  %v561_v34 = vld [vmem:[%s3956_s16 + $0xb0] sm:$0xff]  ;;  %v562_v35 = vld [vmem:[%s3956_s16 + $0xb8] sm:$0xff]  ;;  %v559_v42 = vld [vmem:[%s3956_s16 + $0xa0] sm:$0xff] }
  0x71   : > { %2088 = vmatprep.subr.bf16.mxu1 %v3698_v3  ;;  %1129 = vperm.xlu0 %3360, %v823_v51   ;;  %v593_v36 = vld [vmem:[%s3956_s16 + $0x1b0] sm:$0xff]  ;;  %v594_v37 = vld [vmem:[%s3956_s16 + $0x1b8] sm:$0xff]  ;;  %v614_v39 = vpack.c.bf16 %v562_v35, %v561_v34  ;;  %v560_v43 = vld [vmem:[%s3956_s16 + $0xa8] sm:$0xff] }
  0x72   : > { %1134 = vperm.xlu1 %3361, %v824_v53   ;;  %v805_v38 = vld [vmem:[%s5293_s2 + $0x150] sm:$0xff]  ;;  %v806_v40 = vld [vmem:[%s5293_s2 + $0x158] sm:$0xff]  ;;  %v630_v41 = vpack.c.bf16 %v594_v37, %v593_v36  ;;  %v591_v44 = vld [vmem:[%s3956_s16 + $0x1a0] sm:$0xff]  ;;  %v613_v47 = vpack.c.bf16 %v560_v43, %v559_v42 }
  0x73   : > { %1800 = vmatpush1.bf16.msra.mxu0 %v604_v52  ;;  %v592_v45 = vld [vmem:[%s3956_s16 + $0x1a8] sm:$0xff]  ;;  %v787_v46 = vld [vmem:[%s5293_s2 + $0xc0] sm:$0xff]  ;;  %v557_v50 = vld [vmem:[%s3956_s16 + $0x90] sm:$0xff] }
  0x74   : > { %2089 = vmatpush1.bf16.msra.mxu1 %v620_v54  ;;  %1801 = vmatprep.subr.bf16.mxu0 %v3698_v3  ;;  %v788_v48 = vld [vmem:[%s5293_s2 + $0xc8] sm:$0xff]  ;;  %v629_v49 = vpack.c.bf16 %v592_v45, %v591_v44  ;;  %v558_v51 = vld [vmem:[%s3956_s16 + $0x98] sm:$0xff]  ;;  %v589_v52 = vld [vmem:[%s3956_s16 + $0x190] sm:$0xff] }
  0x75   : > { %2090 = vmatprep.subr.bf16.mxu1 %v3698_v3  ;;  %889 = vperm.xlu0 %3360, %v775_v59   ;;  %v590_v53 = vld [vmem:[%s3956_s16 + $0x198] sm:$0xff]  ;;  %v819_v54 = vld [vmem:[%s5293_s2 + $0x1c0] sm:$0xff]  ;;  %v612_v55 = vpack.c.bf16 %v558_v51, %v557_v50  ;;  %v820_v56 = vld [vmem:[%s5293_s2 + $0x1c8] sm:$0xff] }
  0x76   : > { %894 = vperm.xlu1 %3361, %v776_v61   ;;  %v628_v57 = vpack.c.bf16 %v590_v53, %v589_v52  ;;  %v555_v58 = vld [vmem:[%s3956_s16 + $0x80] sm:$0xff]  ;;  %v556_v59 = vld [vmem:[%s3956_s16 + $0x88] sm:$0xff]  ;;  %v786_v9 = vld [vmem:[%s5293_s2 + $0xb8] sm:$0xff] }
  0x77   : > { %1802 = vmatpush1.bf16.msra.mxu0 %v603_v60  ;;  %v587_v60 = vld [vmem:[%s3956_s16 + $0x180] sm:$0xff]  ;;  %v588_v61 = vld [vmem:[%s3956_s16 + $0x188] sm:$0xff]  ;;  %v611_v63 = vpack.c.bf16 %v556_v59, %v555_v58  ;;  %v817_v13 = vld [vmem:[%s5293_s2 + $0x1b0] sm:$0xff] }
  0x78   : > { %2091 = vmatpush1.bf16.msra.mxu1 %v619_v62  ;;  %1803 = vmatprep.subr.bf16.mxu0 %v3698_v3  ;;  %v771_v62 = vld [vmem:[%s5293_s2 + $0x40] sm:$0xff]  ;;  %v772_v0 = vld [vmem:[%s5293_s2 + $0x48] sm:$0xff]  ;;  %v627_v1 = vpack.c.bf16 %v588_v61, %v587_v60  ;;  %v801_v21 = vld [vmem:[%s5293_s2 + $0x130] sm:$0xff] }
  0x79   : > { %2092 = vmatprep.subr.bf16.mxu1 %v3698_v3  ;;  %1049 = vperm.xlu0 %3360, %v807_v4   ;;  %v3362_v2 = vld [vmem:[%s5292_s1] ss:$16 sps:$4 sm:$0xff]   ;;  %v3365_v4 = vld [vmem:[%s5292_s1 + $0x8] ss:$16 sps:$4 sm:$0xff]   ;;  %v3374_v12 = vld [vmem:[%s5292_s1 + $0x44] ss:$16 sps:$4 sm:$0xff]  }
  0x7a   : > { %1054 = vperm.xlu1 %3361, %v808_v7   ;;  %v803_v5 = vld [vmem:[%s5293_s2 + $0x140] sm:$0xff]  ;;  %v3370_v7 = vld [vmem:[%s5292_s1 + $0x2c] ss:$16 sps:$4 sm:$0xff]   ;;  %v3373_v11 = vld [vmem:[%s5292_s1 + $0x28] ss:$16 sps:$4 sm:$0xff]  }
  0x7b   : > { %1804 = vmatpush2.bf16.msra.mxu0 %v618_v6  ;;  %v3368_v6 = vld [vmem:[%s5292_s1 + $0x24] ss:$16 sps:$4 sm:$0xff]   ;;  %v3372_v10 = vld [vmem:[%s5292_s1 + $0x20] ss:$16 sps:$4 sm:$0xff]   ;;  %v3379_v19 = vld [vmem:[%s5292_s1 + $0x48] ss:$16 sps:$4 sm:$0xff]  }
  0x7c   : > { %2093 = vmatpush2.bf16.msra.mxu1 %v634_v8  ;;  %1805 = vmatprep.subr.bf16.mxu0 %v3698_v3  ;;  %v785_v8 = vld [vmem:[%s5293_s2 + $0xb0] sm:$0xff]  ;;  %v3385_v27 = vld [vmem:[%s5292_s1 + $0x68] ss:$16 sps:$4 sm:$0xff]   ;;  %v815_v29 = vld [vmem:[%s5293_s2 + $0x1a0] sm:$0xff] }
  0x7d   : > { %2094 = vmatprep.subr.bf16.mxu1 %v3698_v3  ;;  %959 = vperm.xlu0 %3360, %v789_v14   ;;  %v818_v14 = vld [vmem:[%s5293_s2 + $0x1b8] sm:$0xff]  ;;  %v3378_v18 = vld [vmem:[%s5292_s1 + $0x40] ss:$16 sps:$4 sm:$0xff]   ;;  %v3380_v20 = vld [vmem:[%s5292_s1 + $0x64] ss:$16 sps:$4 sm:$0xff]  }
  0x7e   : > { %964 = vperm.xlu1 %3361, %v790_v16   ;;  %v769_v16 = vld [vmem:[%s5293_s2 + $0x30] sm:$0xff]  ;;  %v3391_v35 = vld [vmem:[%s5292_s1 + $0x88] ss:$16 sps:$4 sm:$0xff]   ;;  %v799_v37 = vld [vmem:[%s5293_s2 + $0x120] sm:$0xff] }
  0x7f   : > { %1806 = vmatpush2.bf16.msra.mxu0 %v617_v15  ;;  %v3376_v15 = vld [vmem:[%s5292_s1 + $0x4c] ss:$16 sps:$4 sm:$0xff]   ;;  %v3384_v26 = vld [vmem:[%s5292_s1 + $0x60] ss:$16 sps:$4 sm:$0xff]   ;;  %v3386_v28 = vld [vmem:[%s5292_s1 + $0x84] ss:$16 sps:$4 sm:$0xff]  }
  0x80   : > { %2095 = vmatpush2.bf16.msra.mxu1 %v633_v17  ;;  %1807 = vmatprep.subr.bf16.mxu0 %v3698_v3  ;;  %v770_v17 = vld [vmem:[%s5293_s2 + $0x38] sm:$0xff]  ;;  %v3390_v34 = vld [vmem:[%s5292_s1 + $0x80] ss:$16 sps:$4 sm:$0xff]   ;;  %v3392_v36 = vld [vmem:[%s5292_s1 + $0xa4] ss:$16 sps:$4 sm:$0xff]  }
  0x81   : > { %2096 = vmatprep.subr.bf16.mxu1 %v3698_v3  ;;  %1119 = vperm.xlu0 %3360, %v821_v22   ;;  %v802_v22 = vld [vmem:[%s5293_s2 + $0x138] sm:$0xff]  ;;  %v3396_v42 = vld [vmem:[%s5292_s1 + $0xa0] ss:$16 sps:$4 sm:$0xff]   ;;  %v3398_v45 = vld [vmem:[%s5292_s1 + $0xc4] ss:$16 sps:$4 sm:$0xff]  }
  0x82   : > { %1124 = vperm.xlu1 %3361, %v822_v24   ;;  %v783_v24 = vld [vmem:[%s5293_s2 + $0xa0] sm:$0xff]  ;;  %v813_v43 = vld [vmem:[%s5293_s2 + $0x190] sm:$0xff]  ;;  %v3397_v44 = vld [vmem:[%s5292_s1 + $0xa8] ss:$16 sps:$4 sm:$0xff]  }
  0x83   : > { %1808 = vmatpush2.bf16.msra.mxu0 %v616_v23  ;;  %v3382_v23 = vld [vmem:[%s5292_s1 + $0x6c] ss:$16 sps:$4 sm:$0xff]   ;;  %v3402_v50 = vld [vmem:[%s5292_s1 + $0xc0] ss:$16 sps:$4 sm:$0xff]   ;;  %v3403_v52 = vld [vmem:[%s5292_s1 + $0xc8] ss:$16 sps:$4 sm:$0xff]  }
  0x84   : > { %2097 = vmatpush2.bf16.msra.mxu1 %v632_v25  ;;  %1809 = vmatprep.subr.bf16.mxu0 %v3698_v3  ;;  %v784_v25 = vld [vmem:[%s5293_s2 + $0xa8] sm:$0xff]  ;;  %v797_v51 = vld [vmem:[%s5293_s2 + $0x110] sm:$0xff]  ;;  %v811_v59 = vld [vmem:[%s5293_s2 + $0x180] sm:$0xff] }
  0x85   : > { %2098 = vmatprep.subr.bf16.mxu1 %v3698_v3  ;;  %879 = vperm.xlu0 %3360, %v773_v30   ;;  %v816_v30 = vld [vmem:[%s5293_s2 + $0x1a8] sm:$0xff]  ;;  %v3404_v53 = vld [vmem:[%s5292_s1 + $0xe4] ss:$16 sps:$4 sm:$0xff]   ;;  %v3408_v58 = vld [vmem:[%s5292_s1 + $0xe0] ss:$16 sps:$4 sm:$0xff]  }
  0x86   : > { %884 = vperm.xlu1 %3361, %v774_v32   ;;  %v767_v32 = vld [vmem:[%s5293_s2 + $0x20] sm:$0xff]  ;;  %v3409_v60 = vld [vmem:[%s5292_s1 + $0xe8] ss:$16 sps:$4 sm:$0xff]  }
  0x87   : > { %1810 = vmatpush2.bf16.msra.mxu0 %v615_v31  ;;  %v3388_v31 = vld [vmem:[%s5292_s1 + $0x8c] ss:$16 sps:$4 sm:$0xff]   ;;  %v3410_v61 = vld [vmem:[%s5292_s1 + $0x104] ss:$16 sps:$4 sm:$0xff]  }
  0x88   : > { %2099 = vmatpush2.bf16.msra.mxu1 %v631_v33  ;;  %1811 = vmatprep.subr.bf16.mxu0 %v3698_v3  ;;  %v768_v33 = vld [vmem:[%s5293_s2 + $0x28] sm:$0xff] }
  0x89   : > { %2100 = vmatprep.subr.bf16.mxu1 %v3698_v3  ;;  %1039 = vperm.xlu0 %3360, %v805_v38   ;;  %v800_v38 = vld [vmem:[%s5293_s2 + $0x128] sm:$0xff] }
  0x8a   : > { %1044 = vperm.xlu1 %3361, %v806_v40   ;;  %v781_v40 = vld [vmem:[%s5293_s2 + $0x90] sm:$0xff] }
  0x8b   : > { %1812 = vmatpush2.bf16.msra.mxu0 %v614_v39  ;;  %v3394_v39 = vld [vmem:[%s5292_s1 + $0xac] ss:$16 sps:$4 sm:$0xff]  }
  0x8c   : > { %2101 = vmatpush2.bf16.msra.mxu1 %v630_v41  ;;  %1813 = vmatprep.subr.bf16.mxu0 %v3698_v3  ;;  %v782_v41 = vld [vmem:[%s5293_s2 + $0x98] sm:$0xff] }
  0x8d   : > { %2102 = vmatprep.subr.bf16.mxu1 %v3698_v3  ;;  %949 = vperm.xlu0 %3360, %v787_v46   ;;  %v814_v46 = vld [vmem:[%s5293_s2 + $0x198] sm:$0xff] }
  0x8e   : > { %954 = vperm.xlu1 %3361, %v788_v48   ;;  %v765_v48 = vld [vmem:[%s5293_s2 + $0x10] sm:$0xff] }
  0x8f   : > { %1814 = vmatpush2.bf16.msra.mxu0 %v613_v47  ;;  %v3400_v47 = vld [vmem:[%s5292_s1 + $0xcc] ss:$16 sps:$4 sm:$0xff]  }
  0x90   : > { %2103 = vmatpush2.bf16.msra.mxu1 %v629_v49  ;;  %1815 = vmatprep.subr.bf16.mxu0 %v3698_v3  ;;  %v766_v49 = vld [vmem:[%s5293_s2 + $0x18] sm:$0xff] }
  0x91   : > { %2104 = vmatprep.subr.bf16.mxu1 %v3698_v3  ;;  %1109 = vperm.xlu0 %3360, %v819_v54   ;;  %v798_v54 = vld [vmem:[%s5293_s2 + $0x118] sm:$0xff] }
  0x92   : > { %1114 = vperm.xlu1 %3361, %v820_v56   ;;  %v779_v56 = vld [vmem:[%s5293_s2 + $0x80] sm:$0xff] }
  0x93   : > { %1816 = vmatpush2.bf16.msra.mxu0 %v612_v55  ;;  %v3406_v55 = vld [vmem:[%s5292_s1 + $0xec] ss:$16 sps:$4 sm:$0xff]  }
  0x94   : > { %2105 = vmatpush2.bf16.msra.mxu1 %v628_v57  ;;  %1817 = vmatprep.subr.bf16.mxu0 %v3698_v3  ;;  %v780_v57 = vld [vmem:[%s5293_s2 + $0x88] sm:$0xff] }
  0x95   : > { %2106 = vmatprep.subr.bf16.mxu1 %v3698_v3  ;;  %869 = vperm.xlu0 %3360, %v771_v62   ;;  %v804_v3 = vld [vmem:[%s5293_s2 + $0x148] sm:$0xff] }
  0x96   : > { %874 = vperm.xlu1 %3361, %v772_v0   ;;  %v812_v62 = vld [vmem:[%s5293_s2 + $0x188] sm:$0xff]  ;;  %v763_v0 = vld [vmem:[%s5293_s2] sm:$0xff] }
  0x97   : > { %1818 = vmatpush2.bf16.msra.mxu0 %v611_v63  ;;  %v3412_v63 = vld [vmem:[%s5292_s1 + $0x10c] ss:$16 sps:$4 sm:$0xff]  }
  0x98   : > { %2107 = vmatpush2.bf16.msra.mxu1 %v627_v1  ;;  %v764_v1 = vld [vmem:[%s5293_s2 + $0x8] sm:$0xff] }
  0x99   : > { %1029 = vperm.xlu0 %3360, %v803_v5   ;;  %v3416_v5 = vld [vmem:[%s5292_s1 + $0x124] ss:$16 sps:$4 sm:$0xff]  }
  0x9a   : > { %1820 = vmatmul.mubr.bf16.vlgmr.msra.gmra.mxu0 %v3362_v2  ;;  %1034 = vperm.xlu1 %3361, %v804_v3   ;;  %v3414_v2 = vld [vmem:[%s5292_s1 + $0x100] ss:$16 sps:$4 sm:$0xff]  }
  0x9b   : > { %2109 = vmatmul.mubr.bf16.vlgmr.msra.gmra.mxu1 %v3365_v4  ;;  %1827 = vmatprep.mubr.bf16.mxu0 %v3368_v6  ;;  %v3415_v4 = vld [vmem:[%s5292_s1 + $0x108] ss:$16 sps:$4 sm:$0xff]   ;;  %v3418_v6 = vld [vmem:[%s5292_s1 + $0x12c] ss:$16 sps:$4 sm:$0xff]  }
  0x9c   : > { %2116 = vmatprep.mubr.bf16.mxu1 %v3370_v7 }
  0x9d   : > { %939 = vperm.xlu0 %3360, %v785_v8  }
  0x9e   : > { %944 = vperm.xlu1 %3361, %v786_v9  }
  0xa1   : > { %1099 = vperm.xlu0 %3360, %v817_v13   ;;  %v795_v13 = vld [vmem:[%s5293_s2 + $0x100] sm:$0xff] }
  0xa2   : > { %1828 = vmatmul.mubr.bf16.gmra.mxu0 %v3372_v10  ;;  %1104 = vperm.xlu1 %3361, %v818_v14   ;;  %v3420_v10 = vld [vmem:[%s5292_s1 + $0x120] ss:$16 sps:$4 sm:$0xff]   ;;  %v3424_v14 = vld [vmem:[%s5292_s1 + $0x14c] ss:$16 sps:$4 sm:$0xff]  }
  0xa3   : > { %2117 = vmatmul.mubr.bf16.gmra.mxu1 %v3373_v11  ;;  %1835 = vmatprep.mubr.bf16.mxu0 %v3374_v12  ;;  %v3421_v11 = vld [vmem:[%s5292_s1 + $0x128] ss:$16 sps:$4 sm:$0xff]   ;;  %v3422_v12 = vld [vmem:[%s5292_s1 + $0x144] ss:$16 sps:$4 sm:$0xff]  }
  0xa4   : > { %2124 = vmatprep.mubr.bf16.mxu1 %v3376_v15 }
  0xa5   : > { %859 = vperm.xlu0 %3360, %v769_v16  }
  0xa6   : > { %864 = vperm.xlu1 %3361, %v770_v17   ;;  %v796_v17 = vld [vmem:[%s5293_s2 + $0x108] sm:$0xff] }
  0xa9   : > { %1019 = vperm.xlu0 %3360, %v801_v21   ;;  %v3427_v21 = vld [vmem:[%s5292_s1 + $0x148] ss:$16 sps:$4 sm:$0xff]  }
  0xaa   : > { %1836 = vmatmul.mubr.bf16.gmra.mxu0 %v3378_v18  ;;  %1024 = vperm.xlu1 %3361, %v802_v22   ;;  %v3428_v22 = vld [vmem:[%s5292_s1 + $0x164] ss:$16 sps:$4 sm:$0xff]  }
  0xab   : > { %2125 = vmatmul.mubr.bf16.gmra.mxu1 %v3379_v19  ;;  %1843 = vmatprep.mubr.bf16.mxu0 %v3380_v20  ;;  %v3426_v20 = vld [vmem:[%s5292_s1 + $0x140] ss:$16 sps:$4 sm:$0xff]  }
  0xac   : > { %2132 = vmatprep.mubr.bf16.mxu1 %v3382_v23  ;;  %v3430_v23 = vld [vmem:[%s5292_s1 + $0x16c] ss:$16 sps:$4 sm:$0xff]  }
  0xad   : > { %929 = vperm.xlu0 %3360, %v783_v24  }
  0xae   : > { %934 = vperm.xlu1 %3361, %v784_v25  }
  0xb1   : > { %1089 = vperm.xlu0 %3360, %v815_v29   ;;  %v3433_v29 = vld [vmem:[%s5292_s1 + $0x168] ss:$16 sps:$4 sm:$0xff]  }
  0xb2   : > { %1844 = vmatmul.mubr.bf16.gmra.mxu0 %v3384_v26  ;;  %1094 = vperm.xlu1 %3361, %v816_v30   ;;  %v3434_v30 = vld [vmem:[%s5292_s1 + $0x184] ss:$16 sps:$4 sm:$0xff]  }
  0xb3   : > { %2133 = vmatmul.mubr.bf16.gmra.mxu1 %v3385_v27  ;;  %1851 = vmatprep.mubr.bf16.mxu0 %v3386_v28  ;;  %v3432_v28 = vld [vmem:[%s5292_s1 + $0x160] ss:$16 sps:$4 sm:$0xff]  }
  0xb4   : > { %2140 = vmatprep.mubr.bf16.mxu1 %v3388_v31  ;;  %v3436_v31 = vld [vmem:[%s5292_s1 + $0x18c] ss:$16 sps:$4 sm:$0xff]  }
  0xb5   : > { %849 = vperm.xlu0 %3360, %v767_v32  }
  0xb6   : > { %854 = vperm.xlu1 %3361, %v768_v33  }
  0xb9   : > { %1009 = vperm.xlu0 %3360, %v799_v37   ;;  %v3439_v37 = vld [vmem:[%s5292_s1 + $0x188] ss:$16 sps:$4 sm:$0xff]  }
  0xba   : > { %1852 = vmatmul.mubr.bf16.gmra.mxu0 %v3390_v34  ;;  %1014 = vperm.xlu1 %3361, %v800_v38   ;;  %v3440_v38 = vld [vmem:[%s5292_s1 + $0x1a4] ss:$16 sps:$4 sm:$0xff]  }
  0xbb   : > { %2141 = vmatmul.mubr.bf16.gmra.mxu1 %v3391_v35  ;;  %1859 = vmatprep.mubr.bf16.mxu0 %v3392_v36  ;;  %v3438_v36 = vld [vmem:[%s5292_s1 + $0x180] ss:$16 sps:$4 sm:$0xff]  }
  0xbc   : > { %2148 = vmatprep.mubr.bf16.mxu1 %v3394_v39  ;;  %v3442_v39 = vld [vmem:[%s5292_s1 + $0x1ac] ss:$16 sps:$4 sm:$0xff]  }
  0xbd   : > { %919 = vperm.xlu0 %3360, %v781_v40  }
  0xbe   : > { %924 = vperm.xlu1 %3361, %v782_v41  }
  0xc1   : > { %1079 = vperm.xlu0 %3360, %v813_v43  }
  0xc2   : > { %1860 = vmatmul.mubr.bf16.gmra.mxu0 %v3396_v42  ;;  %1084 = vperm.xlu1 %3361, %v814_v46   ;;  %v3446_v46 = vld [vmem:[%s5292_s1 + $0x1c4] ss:$16 sps:$4 sm:$0xff]  }
  0xc3   : > { %2149 = vmatmul.mubr.bf16.gmra.mxu1 %v3397_v44  ;;  %1867 = vmatprep.mubr.bf16.mxu0 %v3398_v45  ;;  %v3444_v44 = vld [vmem:[%s5292_s1 + $0x1a0] ss:$16 sps:$4 sm:$0xff]   ;;  %v3445_v45 = vld [vmem:[%s5292_s1 + $0x1a8] ss:$16 sps:$4 sm:$0xff]  }
  0xc4   : > { %2156 = vmatprep.mubr.bf16.mxu1 %v3400_v47  ;;  %v3448_v47 = vld [vmem:[%s5292_s1 + $0x1cc] ss:$16 sps:$4 sm:$0xff]  }
  0xc5   : > { %839 = vperm.xlu0 %3360, %v765_v48  }
  0xc6   : > { %844 = vperm.xlu1 %3361, %v766_v49  }
  0xc9   : > { %999 = vperm.xlu0 %3360, %v797_v51  }
  0xca   : > { %1868 = vmatmul.mubr.bf16.gmra.mxu0 %v3402_v50  ;;  %1004 = vperm.xlu1 %3361, %v798_v54   ;;  %v3452_v54 = vld [vmem:[%s5292_s1 + $0x1e4] ss:$16 sps:$4 sm:$0xff]  }
  0xcb   : > { %2157 = vmatmul.mubr.bf16.gmra.mxu1 %v3403_v52  ;;  %1875 = vmatprep.mubr.bf16.mxu0 %v3404_v53  ;;  %v3450_v52 = vld [vmem:[%s5292_s1 + $0x1c0] ss:$16 sps:$4 sm:$0xff]   ;;  %v3451_v53 = vld [vmem:[%s5292_s1 + $0x1c8] ss:$16 sps:$4 sm:$0xff]  }
  0xcc   : > { %2164 = vmatprep.mubr.bf16.mxu1 %v3406_v55  ;;  %v3454_v55 = vld [vmem:[%s5292_s1 + $0x1ec] ss:$16 sps:$4 sm:$0xff]  }
  0xcd   : > { %909 = vperm.xlu0 %3360, %v779_v56  }
  0xce   : > { %914 = vperm.xlu1 %3361, %v780_v57  }
  0xd1   : > { %1069 = vperm.xlu0 %3360, %v811_v59  }
  0xd2   : > { %1876 = vmatmul.mubr.bf16.gmra.mxu0 %v3408_v58  ;;  %1074 = vperm.xlu1 %3361, %v812_v62   ;;  %v3458_v62 = vld [vmem:[%s5292_s1 + $0x204] ss:$16 sps:$4 sm:$0xff]  }
  0xd3   : > { %2165 = vmatmul.mubr.bf16.gmra.mxu1 %v3409_v60  ;;  %1883 = vmatprep.mubr.bf16.mxu0 %v3410_v61  ;;  %v3456_v60 = vld [vmem:[%s5292_s1 + $0x1e0] ss:$16 sps:$4 sm:$0xff]   ;;  %v3457_v61 = vld [vmem:[%s5292_s1 + $0x1e8] ss:$16 sps:$4 sm:$0xff]  }
  0xd4   : > { %2172 = vmatprep.mubr.bf16.mxu1 %v3412_v63  ;;  %v3460_v63 = vld [vmem:[%s5292_s1 + $0x20c] ss:$16 sps:$4 sm:$0xff]  }
  0xd5   : > { %829 = vperm.xlu0 %3360, %v763_v0  }
  0xd6   : > { %834 = vperm.xlu1 %3361, %v764_v1  }
  0xd8   : > { %v4360_v3 = vpop.permute.xlu0 %979 }
  0xd9   : > { %v4362_v7 = vpop.permute.xlu1 %1139  ;;  %989 = vperm.xlu0 %3360, %v795_v13  }
  0xda   : > { %5303 = vst [vmem:[#allocation7_spill] sm:$0xff] %v4362_v7  ;;  %1884 = vmatmul.mubr.bf16.gmra.mxu0 %v3414_v2  ;;  %994 = vperm.xlu1 %3361, %v796_v17  }
  0xdb   : > { %2173 = vmatmul.mubr.bf16.gmra.mxu1 %v3415_v4  ;;  %1891 = vmatprep.mubr.bf16.mxu0 %v3416_v5  ;;  %v3462_v5 = vld [vmem:[%s5292_s1 + $0x200] ss:$16 sps:$4 sm:$0xff]  }
  0xdc   : > { %2180 = vmatprep.mubr.bf16.mxu1 %v3418_v6  ;;  %v4364_v8 = vpop.permute.xlu0 %984  ;;  %v3463_v6 = vld [vmem:[%s5292_s1 + $0x208] ss:$16 sps:$4 sm:$0xff]  }
  0xdd   : > { %v4366_v9 = vpop.permute.xlu1 %1144 }
  0xde   : > { %5304 = vst [vmem:[#allocation8_spill] sm:$0xff] %v4366_v9 }
  0xe0   : > { %v4383_v15 = vpop.permute.xlu0 %899 }
  0xe1   : > { %v4385_v16 = vpop.permute.xlu1 %904 }
  0xe2   : > { %1892 = vmatmul.mubr.bf16.gmra.mxu0 %v3420_v10  ;;  %v3464_v10 = vld [vmem:[%s5292_s1 + $0x224] ss:$16 sps:$4 sm:$0xff]  }
  0xe3   : > { %2181 = vmatmul.mubr.bf16.gmra.mxu1 %v3421_v11  ;;  %1899 = vmatprep.mubr.bf16.mxu0 %v3422_v12  ;;  %v3466_v11 = vld [vmem:[%s5292_s1 + $0x22c] ss:$16 sps:$4 sm:$0xff]  }
  0xe4   : > { %2188 = vmatprep.mubr.bf16.mxu1 %v3424_v14  ;;  %v4390_v18 = vpop.permute.xlu0 %1059 }
  0xe5   : > { %5305 = vst [vmem:[#allocation9_spill] sm:$0xff] %v4390_v18  ;;  %v4392_v19 = vpop.permute.xlu1 %1064 }
  0xe6   : > { %5306 = vst [vmem:[#allocation10_spill] sm:$0xff] %v4392_v19 }
  0xe8   : > { %v4406_v24 = vpop.permute.xlu0 %969 }
  0xe9   : > { %v4408_v25 = vpop.permute.xlu1 %974 }
  0xea   : > { %1900 = vmatmul.mubr.bf16.gmra.mxu0 %v3426_v20  ;;  %v3468_v20 = vld [vmem:[%s5292_s1 + $0x220] ss:$16 sps:$4 sm:$0xff]  }
  0xeb   : > { %2189 = vmatmul.mubr.bf16.gmra.mxu1 %v3427_v21  ;;  %1907 = vmatprep.mubr.bf16.mxu0 %v3428_v22  ;;  %v3469_v21 = vld [vmem:[%s5292_s1 + $0x228] ss:$16 sps:$4 sm:$0xff]   ;;  %v3470_v22 = vld [vmem:[%s5292_s1 + $0x244] ss:$16 sps:$4 sm:$0xff]  }
  0xec   : > { %2196 = vmatprep.mubr.bf16.mxu1 %v3430_v23  ;;  %v4410_v26 = vpop.permute.xlu0 %1129  ;;  %v3472_v23 = vld [vmem:[%s5292_s1 + $0x24c] ss:$16 sps:$4 sm:$0xff]  }
  0xed   : > { %5307 = vst [vmem:[#allocation11_spill] sm:$0xff] %v4410_v26  ;;  %v4412_v27 = vpop.permute.xlu1 %1134  ;;  %v3516_v26 = vld [vmem:[%s5292_s1 + $0x320] ss:$16 sps:$4 sm:$0xff]  }
  0xee   : > { %5308 = vst [vmem:[#allocation12_spill] sm:$0xff] %v4412_v27 }
  0xf0   : > { %v4426_v32 = vpop.permute.xlu0 %889 }
  0xf1   : > { %v4428_v33 = vpop.permute.xlu1 %894 }
  0xf2   : > { %1908 = vmatmul.mubr.bf16.gmra.mxu0 %v3432_v28 }
  0xf3   : > { %2197 = vmatmul.mubr.bf16.gmra.mxu1 %v3433_v29  ;;  %1915 = vmatprep.mubr.bf16.mxu0 %v3434_v30 }
  0xf4   : > { %2204 = vmatprep.mubr.bf16.mxu1 %v3436_v31  ;;  %v4430_v34 = vpop.permute.xlu0 %1049 }
  0xf5   : > { %5309 = vst [vmem:[#allocation13_spill] sm:$0xff] %v4430_v34  ;;  %v4432_v35 = vpop.permute.xlu1 %1054 }
  0xf6   : > { %5310 = vst [vmem:[#allocation14_spill] sm:$0xff] %v4432_v35 }
  0xf8   : > { %v4446_v40 = vpop.permute.xlu0 %959 }
  0xf9   : > { %v4448_v41 = vpop.permute.xlu1 %964 }
  0xfa   : > { %1916 = vmatmul.mubr.bf16.gmra.mxu0 %v3438_v36  ;;  %v3474_v36 = vld [vmem:[%s5292_s1 + $0x240] ss:$16 sps:$4 sm:$0xff]  }
  0xfb   : > { %2205 = vmatmul.mubr.bf16.gmra.mxu1 %v3439_v37  ;;  %1923 = vmatprep.mubr.bf16.mxu0 %v3440_v38  ;;  %v3475_v37 = vld [vmem:[%s5292_s1 + $0x248] ss:$16 sps:$4 sm:$0xff]   ;;  %v3476_v38 = vld [vmem:[%s5292_s1 + $0x264] ss:$16 sps:$4 sm:$0xff]  }
  0xfc   : > { %2212 = vmatprep.mubr.bf16.mxu1 %v3442_v39  ;;  %v4450_v42 = vpop.permute.xlu0 %1119  ;;  %v3478_v39 = vld [vmem:[%s5292_s1 + $0x26c] ss:$16 sps:$4 sm:$0xff]  }
  0xfd   : > { %5311 = vst [vmem:[#allocation15_spill] sm:$0xff] %v4450_v42  ;;  %v4452_v43 = vpop.permute.xlu1 %1124 }
  0xfe   : > { %5312 = vst [vmem:[#allocation16_spill] sm:$0xff] %v4452_v43 }
 0x100   : > { %v4466_v48 = vpop.permute.xlu0 %879 }
 0x101   : > { %v4468_v49 = vpop.permute.xlu1 %884 }
 0x102   : > { %1924 = vmatmul.mubr.bf16.gmra.mxu0 %v3444_v44 }
 0x103   : > { %2213 = vmatmul.mubr.bf16.gmra.mxu1 %v3445_v45  ;;  %1931 = vmatprep.mubr.bf16.mxu0 %v3446_v46 }
 0x104   : > { %2220 = vmatprep.mubr.bf16.mxu1 %v3448_v47  ;;  %v4470_v50 = vpop.permute.xlu0 %1039 }
 0x105   : > { %v4472_v51 = vpop.permute.xlu1 %1044 }
 0x106   : > { %5313 = vst [vmem:[#allocation17_spill] sm:$0xff] %v4472_v51 }
 0x108   : > { %v4486_v56 = vpop.permute.xlu0 %949 }
 0x109   : > { %v4488_v57 = vpop.permute.xlu1 %954 }
 0x10a   : > { %1932 = vmatmul.mubr.bf16.gmra.mxu0 %v3450_v52  ;;  %v3480_v52 = vld [vmem:[%s5292_s1 + $0x260] ss:$16 sps:$4 sm:$0xff]  }
 0x10b   : > { %2221 = vmatmul.mubr.bf16.gmra.mxu1 %v3451_v53  ;;  %1939 = vmatprep.mubr.bf16.mxu0 %v3452_v54  ;;  %v3481_v53 = vld [vmem:[%s5292_s1 + $0x268] ss:$16 sps:$4 sm:$0xff]   ;;  %v3482_v54 = vld [vmem:[%s5292_s1 + $0x284] ss:$16 sps:$4 sm:$0xff]  }
 0x10c   : > { %2228 = vmatprep.mubr.bf16.mxu1 %v3454_v55  ;;  %v4490_v58 = vpop.permute.xlu0 %1109  ;;  %v3484_v55 = vld [vmem:[%s5292_s1 + $0x28c] ss:$16 sps:$4 sm:$0xff]  }
 0x10d   : > { %5314 = vst [vmem:[#allocation18_spill] sm:$0xff] %v4490_v58  ;;  %v4492_v59 = vpop.permute.xlu1 %1114 }
 0x10e   : > { %5315 = vst [vmem:[#allocation19_spill] sm:$0xff] %v4492_v59 }
 0x110   : > { %v4506_v0 = vpop.permute.xlu0 %869 }
 0x111   : > { %v4508_v1 = vpop.permute.xlu1 %874 }
 0x112   : > { %1940 = vmatmul.mubr.bf16.gmra.mxu0 %v3456_v60 }
 0x113   : > { %2229 = vmatmul.mubr.bf16.gmra.mxu1 %v3457_v61  ;;  %1947 = vmatprep.mubr.bf16.mxu0 %v3458_v62 }
 0x114   : > { %2236 = vmatprep.mubr.bf16.mxu1 %v3460_v63  ;;  %v4510_v2 = vpop.permute.xlu0 %1029 }
 0x115   : > { %v4512_v4 = vpop.permute.xlu1 %1034 }
 0x118   : > { %v4526_v12 = vpop.permute.xlu0 %939 }
 0x119   : > { %v4528_v13 = vpop.permute.xlu1 %944 }
 0x11a   : > { %1948 = vmatmul.mubr.bf16.gmra.mxu0 %v3462_v5  ;;  %v3486_v5 = vld [vmem:[%s5292_s1 + $0x280] ss:$16 sps:$4 sm:$0xff]  }
 0x11b   : > { %2237 = vmatmul.mubr.bf16.gmra.mxu1 %v3463_v6  ;;  %1955 = vmatprep.mubr.bf16.mxu0 %v3464_v10  ;;  %v3487_v6 = vld [vmem:[%s5292_s1 + $0x288] ss:$16 sps:$4 sm:$0xff]   ;;  %v3488_v10 = vld [vmem:[%s5292_s1 + $0x2a4] ss:$16 sps:$4 sm:$0xff]  }
 0x11c   : > { %2244 = vmatprep.mubr.bf16.mxu1 %v3466_v11  ;;  %v4530_v14 = vpop.permute.xlu0 %1099  ;;  %v3490_v11 = vld [vmem:[%s5292_s1 + $0x2ac] ss:$16 sps:$4 sm:$0xff]  }
 0x11d   : > { %5316 = vst [vmem:[#allocation20_spill] sm:$0xff] %v4530_v14  ;;  %v4532_v17 = vpop.permute.xlu1 %1104  ;;  %v3512_v14 = vld [vmem:[%s5292_s1 + $0x324] ss:$16 sps:$4 sm:$0xff]  }
 0x11e   : > { %5317 = vst [vmem:[#allocation21_spill] sm:$0xff] %v4532_v17 }
 0x120   : > { %v4546_v28 = vpop.permute.xlu0 %859 }
 0x121   : > { %v4548_v29 = vpop.permute.xlu1 %864 }
 0x122   : > { %1956 = vmatmul.mubr.bf16.gmra.mxu0 %v3468_v20 }
 0x123   : > { %2245 = vmatmul.mubr.bf16.gmra.mxu1 %v3469_v21  ;;  %1963 = vmatprep.mubr.bf16.mxu0 %v3470_v22 }
 0x124   : > { %2252 = vmatprep.mubr.bf16.mxu1 %v3472_v23  ;;  %v4550_v30 = vpop.permute.xlu0 %1019  ;;  %v3492_v23 = vld [vmem:[%s5292_s1 + $0x2a0] ss:$16 sps:$4 sm:$0xff]  }
 0x125   : > { %v4552_v31 = vpop.permute.xlu1 %1024 }
 0x128   : > { %v4566_v44 = vpop.permute.xlu0 %929 }
 0x129   : > { %v4568_v45 = vpop.permute.xlu1 %934 }
 0x12a   : > { %1964 = vmatmul.mubr.bf16.gmra.mxu0 %v3474_v36 }
 0x12b   : > { %2253 = vmatmul.mubr.bf16.gmra.mxu1 %v3475_v37  ;;  %1971 = vmatprep.mubr.bf16.mxu0 %v3476_v38  ;;  %v3493_v37 = vld [vmem:[%s5292_s1 + $0x2a8] ss:$16 sps:$4 sm:$0xff]   ;;  %v3494_v38 = vld [vmem:[%s5292_s1 + $0x2c4] ss:$16 sps:$4 sm:$0xff]  }
 0x12c   : > { %2260 = vmatprep.mubr.bf16.mxu1 %v3478_v39  ;;  %v4570_v46 = vpop.permute.xlu0 %1089  ;;  %v3496_v39 = vld [vmem:[%s5292_s1 + $0x2cc] ss:$16 sps:$4 sm:$0xff]  }
 0x12d   : > { %5318 = vst [vmem:[#allocation22_spill] sm:$0xff] %v4570_v46  ;;  %v4572_v47 = vpop.permute.xlu1 %1094  ;;  %v3510_v46 = vld [vmem:[%s5292_s1 + $0x300] ss:$16 sps:$4 sm:$0xff]  }
 0x12e   : > { %5319 = vst [vmem:[#allocation23_spill] sm:$0xff] %v4572_v47  ;;  %v3511_v47 = vld [vmem:[%s5292_s1 + $0x308] ss:$16 sps:$4 sm:$0xff]  }
 0x130   : > { %v4586_v60 = vpop.permute.xlu0 %849 }
 0x131   : > { %v4588_v61 = vpop.permute.xlu1 %854 }
 0x132   : > { %1972 = vmatmul.mubr.bf16.gmra.mxu0 %v3480_v52 }
 0x133   : > { %2261 = vmatmul.mubr.bf16.gmra.mxu1 %v3481_v53  ;;  %1979 = vmatprep.mubr.bf16.mxu0 %v3482_v54  ;;  %v3498_v54 = vld [vmem:[%s5292_s1 + $0x2c0] ss:$16 sps:$4 sm:$0xff]  }
 0x134   : > { %2268 = vmatprep.mubr.bf16.mxu1 %v3484_v55  ;;  %v4590_v62 = vpop.permute.xlu0 %1009 }
 0x135   : > { %v4592_v63 = vpop.permute.xlu1 %1014 }
 0x138   : > { %v4606_v20 = vpop.permute.xlu0 %919 }
 0x139   : > { %v4608_v21 = vpop.permute.xlu1 %924 }
 0x13a   : > { %1980 = vmatmul.mubr.bf16.gmra.mxu0 %v3486_v5  ;;  %v3499_v5 = vld [vmem:[%s5292_s1 + $0x2c8] ss:$16 sps:$4 sm:$0xff]  }
 0x13b   : > { %2269 = vmatmul.mubr.bf16.gmra.mxu1 %v3487_v6  ;;  %1987 = vmatprep.mubr.bf16.mxu0 %v3488_v10  ;;  %v3500_v6 = vld [vmem:[%s5292_s1 + $0x2e4] ss:$16 sps:$4 sm:$0xff]   ;;  %v3502_v10 = vld [vmem:[%s5292_s1 + $0x2ec] ss:$16 sps:$4 sm:$0xff]  }
 0x13c   : > { %2276 = vmatprep.mubr.bf16.mxu1 %v3490_v11  ;;  %v4610_v22 = vpop.permute.xlu0 %1079 }
 0x13d   : > { %5320 = vst [vmem:[#allocation24_spill] sm:$0xff] %v4610_v22  ;;  %v4615_v36 = vpop.permute.xlu1 %1084 }
 0x13e   : > { %5321 = vst [vmem:[#allocation25_spill] sm:$0xff] %v4615_v36 }
 0x140   : > { %v840_v52 = vpop.permute.xlu0 %839 }
 0x141   : > { %v4626_v53 = vpop.permute.xlu1 %844 }
 0x142   : > { %1988 = vmatmul.mubr.bf16.gmra.mxu0 %v3492_v23 }
 0x143   : > { %2277 = vmatmul.mubr.bf16.gmra.mxu1 %v3493_v37  ;;  %1995 = vmatprep.mubr.bf16.mxu0 %v3494_v38  ;;  %v3504_v37 = vld [vmem:[%s5292_s1 + $0x2e0] ss:$16 sps:$4 sm:$0xff]   ;;  %v3505_v38 = vld [vmem:[%s5292_s1 + $0x2e8] ss:$16 sps:$4 sm:$0xff]  }
 0x144   : > { %2284 = vmatprep.mubr.bf16.mxu1 %v3496_v39  ;;  %v4631_v55 = vpop.permute.xlu0 %999  ;;  %v3506_v39 = vld [vmem:[%s5292_s1 + $0x304] ss:$16 sps:$4 sm:$0xff]  }
 0x145   : > { %v4642_v11 = vpop.permute.xlu1 %1004 }
 0x148   : > { %v4644_v23 = vpop.permute.xlu0 %909 }
 0x14a   : > { %1996 = vmatmul.mubr.bf16.gmra.mxu0 %v3498_v54  ;;  %v4655_v54 = vpop.permute.xlu1 %914 }
 0x14b   : > { %2285 = vmatmul.mubr.bf16.gmra.mxu1 %v3499_v5  ;;  %2003 = vmatprep.mubr.bf16.mxu0 %v3500_v6  ;;  %v3508_v5 = vld [vmem:[%s5292_s1 + $0x30c] ss:$16 sps:$4 sm:$0xff]  }
 0x14c   : > { %2292 = vmatprep.mubr.bf16.mxu1 %v3502_v10  ;;  %v4660_v6 = vpop.permute.xlu0 %1069 }
 0x14d   : > { %5322 = vst [vmem:[#allocation26_spill] sm:$0xff] %v4660_v6 }
 0x14e   : > { %v4662_v10 = vpop.permute.xlu1 %1074 }
 0x14f   : > { %5323 = vst [vmem:[#allocation27_spill] sm:$0xff] %v4662_v10 }
 0x152   : > { %2004 = vmatmul.mubr.bf16.gmra.mxu0 %v3504_v37  ;;  %v830_v37 = vpop.permute.xlu0 %829  ;;  %v835_v59 = vpop.permute.xlu1 %834 }
 0x153   : > { %2293 = vmatmul.mubr.bf16.gmra.mxu1 %v3505_v38  ;;  %2011 = vmatprep.mubr.bf16.mxu0 %v3506_v39  ;;  %v3514_v38 = vld [vmem:[%s5292_s1 + $0x32c] ss:$16 sps:$4 sm:$0xff]  }
 0x154   : > { %2300 = vmatprep.mubr.bf16.mxu1 %v3508_v5 }
 0x15a   : > { %v1821_v39 = vpop.f32.mrf.mxu0  ;;  %2012 = vmatmul.mubr.bf16.gmra.mxu0 %v3510_v46  ;;  %v3517_v46 = vld [vmem:[%s5292_s1 + $0x328] ss:$16 sps:$4 sm:$0xff]  }
 0x15b   : > { %v1822_v5 = vadd.f32 %v1821_v39, %v830_v37  ;;  %v2110_v17 = vpop.f32.mrf.mxu1  ;;  %2301 = vmatmul.mubr.bf16.gmra.mxu1 %v3511_v47  ;;  %2019 = vmatprep.mubr.bf16.mxu0 %v3512_v14  ;;  %v3518_v14 = vld [vmem:[%s5292_s1 + $0x344] ss:$16 sps:$4 sm:$0xff]  }
 0x15c   : > { %v1823_v58 = vpop.f32.mrf.mxu0  ;;  %2308 = vmatprep.mubr.bf16.mxu1 %v3514_v38 }
 0x15d   : > { %v2111_v42 = vadd.f32 %v2110_v17, %v1822_v5  ;;  %v2112_v9 = vpop.f32.mrf.mxu1 }
 0x15e   : > { %v1824_v43 = vpop.f32.mrf.mxu0  ;;  %v3520_v9 = vld [vmem:[%s5292_s1 + $0x34c] ss:$16 sps:$4 sm:$0xff]  }
 0x15f   : > { %v1825_v7 = vadd.f32 %v1824_v43, %v835_v59  ;;  %v2113_v27 = vpop.f32.mrf.mxu1  ;;  %v2365_v38 = vmax.f32 %v2111_v42, 0.0  ;;  %v3523_v42 = vld [vmem:[%s5292_s1 + $0x348] ss:$16 sps:$4 sm:$0xff]  }
 0x160   : > { %v1826_v58 = vpop.f32.mrf.mxu0 }
 0x161   : > { %v2114_v17 = vadd.f32 %v2113_v27, %v1825_v7  ;;  %v2115_v47 = vpop.f32.mrf.mxu1  ;;  %v3522_v7 = vld [vmem:[%s5292_s1 + $0x340] ss:$16 sps:$4 sm:$0xff]  }
 0x162   : > { %v1829_v37 = vpop.f32.mrf.mxu0  ;;  %2020 = vmatmul.mubr.bf16.gmra.mxu0 %v3516_v26 }
 0x163   : > { %v2366_v43 = vmax.f32 %v2114_v17, 0.0  ;;  %v1830_v59 = vadd.f32 %v1829_v37, %v840_v52  ;;  %v2118_v39 = vpop.f32.mrf.mxu1  ;;  %2309 = vmatmul.mubr.bf16.gmra.mxu1 %v3517_v46  ;;  %2027 = vmatprep.mubr.bf16.mxu0 %v3518_v14  ;;  %v3524_v52 = vld [vmem:[%s5292_s1 + $0x364] ss:$16 sps:$4 sm:$0xff]   ;;  %v3526_v14 = vld [vmem:[%s5292_s1 + $0x36c] ss:$16 sps:$4 sm:$0xff]  }
 0x164   : > { %v1831_v5 = vpop.f32.mrf.mxu0  ;;  %2316 = vmatprep.mubr.bf16.mxu1 %v3520_v9 }
 0x165   : > { %v4688_v36 = vpack.c.bf16 %v2366_v43, %v2365_v38  ;;  %v2119_v22 = vadd.f32 %v2118_v39, %v1830_v59  ;;  %v2120_v58 = vpop.f32.mrf.mxu1 }
 0x166   : > { %v1832_v10 = vpop.f32.mrf.mxu0 }
 0x167   : > { %v1833_v27 = vadd.f32 %v1832_v10, %v4626_v53  ;;  %v2121_v26 = vpop.f32.mrf.mxu1  ;;  %v2367_v37 = vmax.f32 %v2119_v22, 0.0 }
 0x168   : > { %v1834_v46 = vpop.f32.mrf.mxu0 }
 0x169   : > { %v2122_v9 = vadd.f32 %v2121_v26, %v1833_v27  ;;  %v2123_v17 = vpop.f32.mrf.mxu1  ;;  %v3528_v27 = vld [vmem:[%s5292_s1 + $0x360] ss:$16 sps:$4 sm:$0xff]   ;;  %v3532_v26 = vld [vmem:[%s5292_s1 + $0x384] ss:$16 sps:$4 sm:$0xff]  }
 0x16a   : > { %v1837_v47 = vpop.f32.mrf.mxu0  ;;  %2028 = vmatmul.mubr.bf16.gmra.mxu0 %v3522_v7 }
 0x16b   : > { %v2368_v53 = vmax.f32 %v2122_v9, 0.0  ;;  %v1838_v10 = vadd.f32 %v1837_v47, %v4586_v60  ;;  %v2126_v38 = vpop.f32.mrf.mxu1  ;;  %2317 = vmatmul.mubr.bf16.gmra.mxu1 %v3523_v42  ;;  %2035 = vmatprep.mubr.bf16.mxu0 %v3524_v52  ;;  %v3529_v60 = vld [vmem:[%s5292_s1 + $0x368] ss:$16 sps:$4 sm:$0xff]   ;;  %v3535_v52 = vld [vmem:[%s5292_s1 + $0x38c] ss:$16 sps:$4 sm:$0xff]  }
 0x16c   : > { %v1839_v43 = vpop.f32.mrf.mxu0  ;;  %2324 = vmatprep.mubr.bf16.mxu1 %v3526_v14 }
 0x16d   : > { %v4704_v59 = vpack.c.bf16 %v2368_v53, %v2367_v37  ;;  %v2127_v39 = vadd.f32 %v2126_v38, %v1838_v10  ;;  %v2128_v5 = vpop.f32.mrf.mxu1 }
 0x16e   : > { %v1840_v58 = vpop.f32.mrf.mxu0 }
 0x16f   : > { %v1841_v7 = vadd.f32 %v1840_v58, %v4588_v61  ;;  %v2129_v22 = vpop.f32.mrf.mxu1  ;;  %v2369_v17 = vmax.f32 %v2127_v39, 0.0  ;;  %v3530_v58 = vld [vmem:[%s5292_s1 + $0x380] ss:$16 sps:$4 sm:$0xff]  }
 0x170   : > { %v1842_v42 = vpop.f32.mrf.mxu0 }
 0x171   : > { %v2130_v46 = vadd.f32 %v2129_v22, %v1841_v7  ;;  %v2131_v14 = vpop.f32.mrf.mxu1  ;;  %v3538_v7 = vld [vmem:[%s5292_s1 + $0x3a4] ss:$16 sps:$4 sm:$0xff]  }
 0x172   : > { %v1845_v9 = vpop.f32.mrf.mxu0  ;;  %2036 = vmatmul.mubr.bf16.gmra.mxu0 %v3528_v27 }
 0x173   : > { %v2370_v61 = vmax.f32 %v2130_v46, 0.0  ;;  %v1846_v47 = vadd.f32 %v1845_v9, %v4546_v28  ;;  %v2134_v37 = vpop.f32.mrf.mxu1  ;;  %2325 = vmatmul.mubr.bf16.gmra.mxu1 %v3529_v60  ;;  %2043 = vmatprep.mubr.bf16.mxu0 %v3532_v26  ;;  %v3533_v28 = vld [vmem:[%s5292_s1 + $0x388] ss:$16 sps:$4 sm:$0xff]   ;;  %v3541_v60 = vld [vmem:[%s5292_s1 + $0x3ac] ss:$16 sps:$4 sm:$0xff]  }
 0x174   : > { %v1847_v53 = vpop.f32.mrf.mxu0  ;;  %2332 = vmatprep.mubr.bf16.mxu1 %v3535_v52 }
 0x175   : > { %v4720_v10 = vpack.c.bf16 %v2370_v61, %v2369_v17  ;;  %v2135_v38 = vadd.f32 %v2134_v37, %v1846_v47  ;;  %v2136_v43 = vpop.f32.mrf.mxu1 }
 0x176   : > { %v1848_v5 = vpop.f32.mrf.mxu0  ;;  %v3536_v43 = vld [vmem:[%s5292_s1 + $0x3a0] ss:$16 sps:$4 sm:$0xff]  }
 0x177   : > { %v1849_v27 = vadd.f32 %v1848_v5, %v4548_v29  ;;  %v2137_v39 = vpop.f32.mrf.mxu1  ;;  %v2371_v46 = vmax.f32 %v2135_v38, 0.0 }
 0x178   : > { %v1850_v22 = vpop.f32.mrf.mxu0 }
 0x179   : > { %v2138_v26 = vadd.f32 %v2137_v39, %v1849_v27  ;;  %v2139_v42 = vpop.f32.mrf.mxu1  ;;  %v3547_v39 = vld [vmem:[%s5292_s1 + $0x3cc] ss:$16 sps:$4 sm:$0xff]  }
 0x17a   : > { %v1853_v52 = vpop.f32.mrf.mxu0  ;;  %2044 = vmatmul.mubr.bf16.gmra.mxu0 %v3530_v58  ;;  %v3544_v58 = vld [vmem:[%s5292_s1 + $0x3c4] ss:$16 sps:$4 sm:$0xff]  }
 0x17b   : > { %v2372_v29 = vmax.f32 %v2138_v26, 0.0  ;;  %v1854_v14 = vadd.f32 %v1853_v52, %v4506_v0  ;;  %v2142_v9 = vpop.f32.mrf.mxu1  ;;  %2333 = vmatmul.mubr.bf16.gmra.mxu1 %v3533_v28  ;;  %2051 = vmatprep.mubr.bf16.mxu0 %v3538_v7  ;;  %v3539_v0 = vld [vmem:[%s5292_s1 + $0x3a8] ss:$16 sps:$4 sm:$0xff]  }
 0x17c   : > { %v1855_v17 = vpop.f32.mrf.mxu0  ;;  %2340 = vmatprep.mubr.bf16.mxu1 %v3541_v60 }
 0x17d   : > { %v4736_v61 = vpack.c.bf16 %v2372_v29, %v2371_v46  ;;  %v2143_v47 = vadd.f32 %v2142_v9, %v1854_v14  ;;  %v2144_v37 = vpop.f32.mrf.mxu1  ;;  %v3542_v17 = vld [vmem:[%s5292_s1 + $0x3c0] ss:$16 sps:$4 sm:$0xff]  }
 0x17e   : > { %v1856_v53 = vpop.f32.mrf.mxu0 }
 0x17f   : > { %v1857_v5 = vadd.f32 %v1856_v53, %v4508_v1  ;;  %v2145_v38 = vpop.f32.mrf.mxu1  ;;  %v2373_v60 = vmax.f32 %v2143_v47, 0.0  ;;  %v3550_v53 = vld [vmem:[%s5292_s1 + $0x3e4] ss:$16 sps:$4 sm:$0xff]  }
 0x180   : > { %v1858_v27 = vpop.f32.mrf.mxu0 }
 0x181   : > { %v2146_v28 = vadd.f32 %v2145_v38, %v1857_v5  ;;  %v2147_v7 = vpop.f32.mrf.mxu1  ;;  %v3553_v5 = vld [vmem:[%s5292_s1 + $0x3ec] ss:$16 sps:$4 sm:$0xff]  }
 0x182   : > { %v1861_v22 = vpop.f32.mrf.mxu0  ;;  %2052 = vmatmul.mubr.bf16.gmra.mxu0 %v3536_v43 }
 0x183   : > { %v2374_v1 = vmax.f32 %v2146_v28, 0.0  ;;  %v1862_v26 = vadd.f32 %v1861_v22, %v4466_v48  ;;  %v2150_v42 = vpop.f32.mrf.mxu1  ;;  %2341 = vmatmul.mubr.bf16.gmra.mxu1 %v3539_v0  ;;  %2059 = vmatprep.mubr.bf16.mxu0 %v3544_v58  ;;  %v3545_v48 = vld [vmem:[%s5292_s1 + $0x3c8] ss:$16 sps:$4 sm:$0xff]  }
 0x184   : > { %v1863_v52 = vpop.f32.mrf.mxu0  ;;  %2348 = vmatprep.mubr.bf16.mxu1 %v3547_v39 }
 0x185   : > { %v4752_v46 = vpack.c.bf16 %v2374_v1, %v2373_v60  ;;  %v2151_v29 = vadd.f32 %v2150_v42, %v1862_v26  ;;  %v2152_v14 = vpop.f32.mrf.mxu1  ;;  %v3548_v42 = vld [vmem:[%s5292_s1 + $0x3e0] ss:$16 sps:$4 sm:$0xff]  }
 0x186   : > { %v1864_v9 = vpop.f32.mrf.mxu0 }
 0x187   : > { %v1865_v37 = vadd.f32 %v1864_v9, %v4468_v49  ;;  %v2153_v47 = vpop.f32.mrf.mxu1  ;;  %v2375_v27 = vmax.f32 %v2151_v29, 0.0 }
 0x188   : > { %v1866_v43 = vpop.f32.mrf.mxu0 }
 0x189   : > { %v2154_v38 = vadd.f32 %v2153_v47, %v1865_v37  ;;  %v2155_v0 = vpop.f32.mrf.mxu1 }
 0x18a   : > { %v1869_v58 = vpop.f32.mrf.mxu0  ;;  %2060 = vmatmul.mubr.bf16.gmra.mxu0 %v3542_v17 }
 0x18b   : > { %v2376_v49 = vmax.f32 %v2154_v38, 0.0  ;;  %v1870_v39 = vadd.f32 %v1869_v58, %v4426_v32  ;;  %v2158_v28 = vpop.f32.mrf.mxu1  ;;  %2349 = vmatmul.mubr.bf16.gmra.mxu1 %v3545_v48  ;;  %2067 = vmatprep.mubr.bf16.mxu0 %v3550_v53  ;;  %v3551_v32 = vld [vmem:[%s5292_s1 + $0x3e8] ss:$16 sps:$4 sm:$0xff]  }
 0x18c   : > { %v1871_v7 = vpop.f32.mrf.mxu0  ;;  %2356 = vmatprep.mubr.bf16.mxu1 %v3553_v5 }
 0x18d   : > { %v4768_v22 = vpack.c.bf16 %v2376_v49, %v2375_v27  ;;  %v2159_v60 = vadd.f32 %v2158_v28, %v1870_v39  ;;  %v2160_v1 = vpop.f32.mrf.mxu1 }
 0x18e   : > { %v1872_v26 = vpop.f32.mrf.mxu0 }
 0x18f   : > { %v1873_v52 = vadd.f32 %v1872_v26, %v4428_v33  ;;  %v2161_v29 = vpop.f32.mrf.mxu1  ;;  %v2377_v47 = vmax.f32 %v2159_v60, 0.0 }
 0x190   : > { %v1874_v14 = vpop.f32.mrf.mxu0 }
 0x191   : > { %v2162_v9 = vadd.f32 %v2161_v29, %v1873_v52  ;;  %v2163_v17 = vpop.f32.mrf.mxu1 }
 0x192   : > { %v1877_v37 = vpop.f32.mrf.mxu0  ;;  %2068 = vmatmul.mubr.bf16.gmra.mxu0 %v3548_v42 }
 0x193   : > { %v2378_v48 = vmax.f32 %v2162_v9, 0.0  ;;  %v1878_v53 = vadd.f32 %v1877_v37, %v4383_v15  ;;  %v2166_v43 = vpop.f32.mrf.mxu1  ;;  %2357 = vmatmul.mubr.bf16.gmra.mxu1 %v3551_v32 }
 0x194   : > { %v1879_v5 = vpop.f32.mrf.mxu0 }
 0x195   : > { %v4778_v38 = vpack.c.bf16 %v2378_v48, %v2377_v47  ;;  %v2167_v33 = vadd.f32 %v2166_v43, %v1878_v53  ;;  %v2168_v0 = vpop.f32.mrf.mxu1 }
 0x196   : > { %v1880_v58 = vpop.f32.mrf.mxu0 }
 0x197   : > { %v1881_v27 = vadd.f32 %v1880_v58, %v4385_v16  ;;  %v2169_v49 = vpop.f32.mrf.mxu1  ;;  %v2379_v26 = vmax.f32 %v2167_v33, 0.0 }
 0x198   : > { %v1882_v39 = vpop.f32.mrf.mxu0 }
 0x199   : > { %v2170_v28 = vadd.f32 %v2169_v49, %v1881_v27  ;;  %v2171_v7 = vpop.f32.mrf.mxu1 }
 0x19a   : > { %v1885_v1 = vpop.f32.mrf.mxu0 }
 0x19b   : > { %v2380_v60 = vmax.f32 %v2170_v28, 0.0  ;;  %v1886_v42 = vadd.f32 %v1885_v1, %v4644_v23  ;;  %v2174_v15 = vpop.f32.mrf.mxu1 }
 0x19c   : > { %v1887_v52 = vpop.f32.mrf.mxu0 }
 0x19d   : > { %v4782_v29 = vpack.c.bf16 %v2380_v60, %v2379_v26  ;;  %v2175_v32 = vadd.f32 %v2174_v15, %v1886_v42  ;;  %v2176_v14 = vpop.f32.mrf.mxu1 }
 0x19e   : > { %v1888_v9 = vpop.f32.mrf.mxu0 }
 0x19f   : > { %v1889_v17 = vadd.f32 %v1888_v9, %v4655_v54  ;;  %v2177_v37 = vpop.f32.mrf.mxu1  ;;  %v2381_v43 = vmax.f32 %v2175_v32, 0.0 }
 0x1a0   : > { %v1890_v16 = vpop.f32.mrf.mxu0 }
 0x1a1   : > { %v2178_v47 = vadd.f32 %v2177_v37, %v1889_v17  ;;  %v2179_v48 = vpop.f32.mrf.mxu1 }
 0x1a2   : > { %v1893_v53 = vpop.f32.mrf.mxu0 }
 0x1a3   : > { %v2382_v5 = vmax.f32 %v2178_v47, 0.0  ;;  %v1894_v33 = vadd.f32 %v1893_v53, %v4606_v20  ;;  %v2182_v0 = vpop.f32.mrf.mxu1 }
 0x1a4   : > { %v1895_v23 = vpop.f32.mrf.mxu0 }
 0x1a5   : > { %v4786_v58 = vpack.c.bf16 %v2382_v5, %v2381_v43  ;;  %v2183_v27 = vadd.f32 %v2182_v0, %v1894_v33  ;;  %v2184_v49 = vpop.f32.mrf.mxu1 }
 0x1a6   : > { %v1896_v39 = vpop.f32.mrf.mxu0 }
 0x1a7   : > { %v1897_v28 = vadd.f32 %v1896_v39, %v4608_v21  ;;  %v2185_v7 = vpop.f32.mrf.mxu1  ;;  %v2383_v42 = vmax.f32 %v2183_v27, 0.0 }
 0x1a8   : > { %v1898_v54 = vpop.f32.mrf.mxu0 }
 0x1a9   : > { %v2186_v1 = vadd.f32 %v2185_v7, %v1897_v28  ;;  %v2187_v26 = vpop.f32.mrf.mxu1 }
 0x1aa   : > { %v4789_v60 = vpop.f32.mrf.mxu0 }
 0x1ab   : > { %v2384_v15 = vmax.f32 %v2186_v1, 0.0  ;;  %v4791_v52 = vpop.f32.mrf.mxu1 }
 0x1ac   : > { %v1903_v20 = vpop.f32.mrf.mxu0 }
 0x1ad   : > { %v4793_v32 = vpack.c.bf16 %v2384_v15, %v2383_v42  ;;  %v2192_v14 = vpop.f32.mrf.mxu1 }
 0x1ae   : > { %v4795_v9 = vpop.f32.mrf.mxu0 }
 0x1af   : > { %v4797_v17 = vpop.f32.mrf.mxu1 }
 0x1b0   : > { %v1906_v37 = vpop.f32.mrf.mxu0 }
 0x1b1   : > { %v2195_v21 = vpop.f32.mrf.mxu1 }
 0x1b2   : > { %v4799_v16 = vpop.f32.mrf.mxu0 }
 0x1b3   : > { %v4801_v47 = vpop.f32.mrf.mxu1 }
 0x1b4   : > { %v1911_v48 = vpop.f32.mrf.mxu0 }
 0x1b5   : > { %v2200_v53 = vpop.f32.mrf.mxu1 }
 0x1b6   : > { %v4803_v43 = vpop.f32.mrf.mxu0 }
 0x1b7   : > { %v4805_v5 = vpop.f32.mrf.mxu1 }
 0x1b8   : > { %v1914_v33 = vpop.f32.mrf.mxu0 }
 0x1b9   : > { %v2203_v0 = vpop.f32.mrf.mxu1 }
 0x1ba   : > { %v1917_v23 = vpop.f32.mrf.mxu0 }
 0x1bb   : > { %v4807_v27 = vpop.f32.mrf.mxu1 }
 0x1bc   : > { %v1919_v49 = vpop.f32.mrf.mxu0 }
 0x1bd   : > { %v2208_v39 = vpop.f32.mrf.mxu1 }
 0x1be   : > { %v1920_v28 = vpop.f32.mrf.mxu0 }
 0x1bf   : > { %v2209_v7 = vpop.f32.mrf.mxu1 }
 0x1c0   : > { %v1922_v54 = vpop.f32.mrf.mxu0 }
 0x1c1   : > { %v2211_v1 = vpop.f32.mrf.mxu1 }
 0x1c2   : > { %v1925_v26 = vpop.f32.mrf.mxu0 }
 0x1c3   : > { %v1926_v42 = vadd.f32 %v1925_v26, %v4446_v40  ;;  %v2214_v15 = vpop.f32.mrf.mxu1 }
 0x1c4   : > { %v1927_v20 = vpop.f32.mrf.mxu0 }
 0x1c5   : > { %v2216_v14 = vpop.f32.mrf.mxu1  ;;  %v2215_v21 = vadd.f32 %v2214_v15, %v1926_v42 }
 0x1c6   : > { %v1928_v37 = vpop.f32.mrf.mxu0 }
 0x1c7   : > { %v1929_v48 = vadd.f32 %v1928_v37, %v4448_v41  ;;  %v2217_v53 = vpop.f32.mrf.mxu1  ;;  %v2391_v39 = vmax.f32 %v2215_v21, 0.0 }
 0x1c8   : > { %v1930_v33 = vpop.f32.mrf.mxu0 }
 0x1c9   : > { %v2218_v0 = vadd.f32 %v2217_v53, %v1929_v48  ;;  %v2219_v6 = vpop.f32.mrf.mxu1 }
 0x1ca   : > { %v1933_v49 = vpop.f32.mrf.mxu0 }
 0x1cb   : > { %v2392_v19 = vmax.f32 %v2218_v0, 0.0  ;;  %v2222_v18 = vpop.f32.mrf.mxu1  ;;  %v1934_v6 = vadd.f32 %v1933_v49, %v4406_v24 }
 0x1cc   : > { %v1935_v54 = vpop.f32.mrf.mxu0 }
 0x1cd   : > { %v4811_v1 = vpack.c.bf16 %v2392_v19, %v2391_v39  ;;  %v2224_v35 = vpop.f32.mrf.mxu1  ;;  %v990_v39 = vpop.permute.xlu0 %989  ;;  %v2223_v54 = vadd.f32 %v2222_v18, %v1934_v6  ;;  %v1913_v18 = vadd.f32 %v4803_v43, %v4528_v13  ;;  %v1905_v13 = vadd.f32 %v4795_v9, %v4568_v45 }
 0x1ce   : > { %v1936_v40 = vpop.f32.mrf.mxu0 }
 0x1cf   : > { %v2225_v26 = vpop.f32.mrf.mxu1  ;;  %v1937_v42 = vadd.f32 %v1936_v40, %v4408_v25  ;;  %v1921_v25 = vadd.f32 %v1920_v28, %v4488_v57  ;;  %v2202_v43 = vadd.f32 %v4805_v5, %v1913_v18  ;;  %v2194_v5 = vadd.f32 %v4797_v17, %v1905_v13 }
 0x1d0   : > { %v1938_v20 = vpop.f32.mrf.mxu0 }
 0x1d1   : > { %v2227_v14 = vpop.f32.mrf.mxu1  ;;  %v2226_v53 = vadd.f32 %v2225_v26, %v1937_v42  ;;  %v1918_v26 = vadd.f32 %v1917_v23, %v4486_v56  ;;  %v2393_v42 = vmax.f32 %v2223_v54, 0.0 }
 0x1d2   : > { %v1941_v34 = vpop.f32.mrf.mxu0 }
 0x1d3   : > { %v1942_v41 = vadd.f32 %v1941_v34, %v4360_v3  ;;  %v2230_v15 = vpop.f32.mrf.mxu1  ;;  %v2394_v3 = vmax.f32 %v2226_v53, 0.0  ;;  %v2207_v56 = vadd.f32 %v4807_v27, %v1918_v26 }
 0x1d4   : > { %v1943_v37 = vpop.f32.mrf.mxu0 }
 0x1d5   : > { %v2232_v21 = vpop.f32.mrf.mxu1  ;;  %v2231_v33 = vadd.f32 %v2230_v15, %v1942_v41  ;;  %v2444_v57 = vpack.c.bf16 %v2394_v3, %v2393_v42 }
 0x1d6   : > { %v1944_v48 = vpop.f32.mrf.mxu0  ;;  %v995_v21 = vpop.permute.xlu1 %994 }
 0x1d7   : > { %v1945_v19 = vadd.f32 %v1944_v48, %v4364_v8  ;;  %v2233_v35 = vpop.f32.mrf.mxu1  ;;  %v2395_v34 = vmax.f32 %v2231_v33, 0.0  ;;  %v2210_v48 = vadd.f32 %v2209_v7, %v1921_v25 }
 0x1d8   : > { %v1946_v0 = vpop.f32.mrf.mxu0 }
 0x1d9   : > { %v2234_v20 = vadd.f32 %v2233_v35, %v1945_v19  ;;  %v2235_v14 = vpop.f32.mrf.mxu1  ;;  %v1910_v19 = vadd.f32 %v4799_v16, %v4526_v12  ;;  %v2390_v35 = vmax.f32 %v2210_v48, 0.0  ;;  %v1902_v12 = vadd.f32 %v4789_v60, %v4566_v44 }
 0x1da   : > { %v1949_v40 = vpop.f32.mrf.mxu0 }
 0x1db   : > { %v2396_v37 = vmax.f32 %v2234_v20, 0.0  ;;  %v1950_v51 = vadd.f32 %v1949_v40, %v990_v39  ;;  %v2238_v24 = vpop.f32.mrf.mxu1  ;;  %v2199_v27 = vadd.f32 %v4801_v47, %v1910_v19  ;;  %v2389_v20 = vmax.f32 %v2207_v56, 0.0 }
 0x1dc   : > { %v1951_v49 = vpop.f32.mrf.mxu0 }
 0x1dd   : > { %v2445_v8 = vpack.c.bf16 %v2396_v37, %v2395_v34  ;;  %v2239_v41 = vadd.f32 %v2238_v24, %v1950_v51  ;;  %v2240_v15 = vpop.f32.mrf.mxu1  ;;  %v2442_v40 = vpack.c.bf16 %v2390_v35, %v2389_v20  ;;  %v2387_v47 = vmax.f32 %v2199_v27, 0.0 }
 0x1de   : > { %v1952_v6 = vpop.f32.mrf.mxu0  ;;  %v2386_v24 = vmax.f32 %v2194_v5, 0.0 }
 0x1df   : > { %v1953_v28 = vadd.f32 %v1952_v6, %v995_v21  ;;  %v2241_v53 = vpop.f32.mrf.mxu1  ;;  %3247 = vmatprep.subr.bf16.mxu0 %v2445_v8  ;;  %v2397_v0 = vmax.f32 %v2239_v41, 0.0 }
 0x1e0   : > { %v1954_v33 = vpop.f32.mrf.mxu0  ;;  %3248 = vmatpush3.bf16.msra.mxu0 %v4782_v29 }
 0x1e1   : > { %v2242_v23 = vadd.f32 %v2241_v53, %v1953_v28  ;;  %v2243_v51 = vpop.f32.mrf.mxu1  ;;  %3249 = vmatprep.subr.bf16.mxu0 %v2444_v57  ;;  %v3699_v53 = vmov 1966171168  }
 0x1e2   : > { %v1957_v7 = vpop.f32.mrf.mxu0  ;;  %v2472_v33 = vunpack.c.l.s4 %v3699_v53 }
 0x1e3   : > { %v2398_v39 = vmax.f32 %v2242_v23, 0.0  ;;  %v1958_v54 = vadd.f32 %v1957_v7, %v4631_v55  ;;  %v2246_v29 = vpop.f32.mrf.mxu1  ;;  %v2388_v55 = vmax.f32 %v2202_v43, 0.0 }
 0x1e4   : > { %v1959_v16 = vpop.f32.mrf.mxu0  ;;  %3250 = vmatpush3.bf16.msra.mxu0 %v4778_v38  ;;  %v2191_v38 = vadd.f32 %v4791_v52, %v1902_v12  ;;  %v2473_v43 = vunpack.c.0.s8 %v2472_v33 }
 0x1e5   : > { %v4833_v14 = vpack.c.bf16 %v2398_v39, %v2397_v0  ;;  %v2247_v45 = vadd.f32 %v2246_v29, %v1958_v54  ;;  %v2248_v9 = vpop.f32.mrf.mxu1  ;;  %3251 = vmatprep.subr.bf16.mxu0 %v4811_v1  ;;  %v2441_v1 = vpack.c.bf16 %v2388_v55, %v2387_v47 }
 0x1e6   : > { %v1960_v25 = vpop.f32.mrf.mxu0 }
 0x1e7   : > { %v1961_v3 = vadd.f32 %v1960_v25, %v4642_v11  ;;  %v2249_v44 = vpop.f32.mrf.mxu1  ;;  %v2399_v21 = vmax.f32 %v2247_v45, 0.0  ;;  %v2385_v11 = vmax.f32 %v2191_v38, 0.0 }
 0x1e8   : > { %v1962_v60 = vpop.f32.mrf.mxu0  ;;  %3252 = vmatpush3.bf16.msra.mxu0 %v4768_v22 }
 0x1e9   : > { %v2250_v34 = vadd.f32 %v2249_v44, %v1961_v3  ;;  %v2251_v37 = vpop.f32.mrf.mxu1  ;;  %3253 = vmatprep.subr.bf16.mxu0 %v2442_v40  ;;  %v2440_v18 = vpack.c.bf16 %v2386_v24, %v2385_v11 }
 0x1ea   : > { %v1965_v49 = vpop.f32.mrf.mxu0 }
 0x1eb   : > { %v2400_v17 = vmax.f32 %v2250_v34, 0.0  ;;  %v1966_v26 = vadd.f32 %v1965_v49, %v4590_v62  ;;  %v2254_v42 = vpop.f32.mrf.mxu1 }
 0x1ec   : > { %v1967_v8 = vpop.f32.mrf.mxu0  ;;  %3254 = vmatpush3.bf16.msra.mxu0 %v4752_v46  ;;  %v2474_v46 = vlaneseq }
 0x1ed   : > { %v4842_v41 = vpack.c.bf16 %v2400_v17, %v2399_v21  ;;  %v2255_v22 = vadd.f32 %v2254_v42, %v1966_v26  ;;  %v2256_v52 = vpop.f32.mrf.mxu1  ;;  %3255 = vmatprep.subr.bf16.mxu0 %v2441_v1 }
 0x1ee   : > { %v1968_v15 = vpop.f32.mrf.mxu0  ;;  %v4847_v7 = vshrl.u32 %v2474_v46, 7 }
 0x1ef   : > { %v1969_v6 = vadd.f32 %v1968_v15, %v4592_v63  ;;  %v2257_v48 = vpop.f32.mrf.mxu1  ;;  %v2401_v19 = vmax.f32 %v2255_v22, 0.0  ;;  %v5324_v22 = vld [vmem:[#allocation17_spill] sm:$0xff] }
 0x1f0   : > { %v1970_v57 = vpop.f32.mrf.mxu0  ;;  %3256 = vmatpush3.bf16.msra.mxu0 %v4736_v61  ;;  %v3239_v61 = vld.sshfl [vmem:[%s5294_s3] sm:$0x33 pattern:$0x75316420] }
 0x1f1   : > { %v2258_v28 = vadd.f32 %v2257_v48, %v1969_v6  ;;  %v2259_v62 = vpop.f32.mrf.mxu1  ;;  %3257 = vmatprep.subr.bf16.mxu0 %v2440_v18  ;;  %v2470_v54 = vcombine.high %v3239_v61, %v3239_v61 }
 0x1f2   : > { %v1973_v56 = vpop.f32.mrf.mxu0  ;;  %v5325_v62 = vld [vmem:[#allocation13_spill] sm:$0xff] }
 0x1f3   : > { %v2402_v23 = vmax.f32 %v2258_v28, 0.0  ;;  %v1974_v51 = vadd.f32 %v1973_v56, %v4550_v30  ;;  %v2262_v13 = vpop.f32.mrf.mxu1  ;;  %v2476_v30 = vsub.s32 %v2473_v43, %v4847_v7 }
 0x1f4   : > { %v1975_v63 = vpop.f32.mrf.mxu0  ;;  %3258 = vmatpush3.bf16.msra.mxu0 %v4720_v10 }
 0x1f5   : > { %v4853_v35 = vpack.c.bf16 %v2402_v23, %v2401_v19  ;;  %v2263_v0 = vadd.f32 %v2262_v13, %v1974_v51  ;;  %v2264_v39 = vpop.f32.mrf.mxu1  ;;  %3259 = vmatprep.subr.bf16.mxu0 %v4793_v32  ;;  %v2484_v27 = vrot.slane %v2470_v54, %v2476_v30  ;;  %v4861_v40 = vrot.slane %v3239_v61, %v2476_v30  ;;  %v5326_v51 = vld [vmem:[#allocation14_spill] sm:$0xff] }
 0x1f6   : > { %v1976_v29 = vpop.f32.mrf.mxu0 }
 0x1f7   : > { %v1977_v12 = vadd.f32 %v1976_v29, %v4552_v31  ;;  %v2265_v16 = vpop.f32.mrf.mxu1  ;;  %2523 = vmatprep.mubr.bf16.mxu0 %v2484_v27  ;;  %v2403_v5 = vmax.f32 %v2263_v0, 0.0  ;;  %v2486_v31 = vcombine.high %v2484_v27, %v2484_v27  ;;  %v5327_v29 = vld [vmem:[#allocation9_spill] sm:$0xff] }
 0x1f8   : > { %v1978_v20 = vpop.f32.mrf.mxu0  ;;  %3260 = vmatpush3.bf16.msra.mxu0 %v4704_v59 }
 0x1f9   : > { %v2266_v10 = vadd.f32 %v2265_v16, %v1977_v12  ;;  %v2267_v45 = vpop.f32.mrf.mxu1  ;;  %3261 = vmatprep.subr.bf16.mxu0 %v4786_v58  ;;  %2563 = vmatprep.mubr.bf16.mxu1 %v2486_v31 }
 0x1fa   : > { %v1981_v9 = vpop.f32.mrf.mxu0 }
 0x1fb   : > { %v2404_v25 = vmax.f32 %v2266_v10, 0.0  ;;  %v1982_v32 = vadd.f32 %v1981_v9, %v4510_v2  ;;  %v2270_v55 = vpop.f32.mrf.mxu1 }
 0x1fc   : > { %v1983_v3 = vpop.f32.mrf.mxu0  ;;  %3262 = vmatpush3.bf16.msra.mxu0 %v4688_v36 }
 0x1fd   : > { %v4864_v44 = vpack.c.bf16 %v2404_v25, %v2403_v5  ;;  %v2271_v59 = vadd.f32 %v2270_v55, %v1982_v32  ;;  %v2272_v60 = vpop.f32.mrf.mxu1  ;;  %v5328_v5 = vld [vmem:[#allocation10_spill] sm:$0xff] }
 0x1fe   : > { %v1984_v38 = vpop.f32.mrf.mxu0 }
 0x1ff   : > { %v1985_v58 = vadd.f32 %v1984_v38, %v4512_v4  ;;  %v2273_v47 = vpop.f32.mrf.mxu1  ;;  %2524 = vmatmul.mubr.bf16.vlgmr.msra.gmra.mxu0 %v4861_v40  ;;  %v2405_v49 = vmax.f32 %v2271_v59, 0.0 }
 0x200   : > { %v1986_v34 = vpop.f32.mrf.mxu0 }
 0x201   : > { %v2274_v2 = vadd.f32 %v2273_v47, %v1985_v58  ;;  %v2275_v37 = vpop.f32.mrf.mxu1  ;;  %v5329_v58 = vld [vmem:[#allocation26_spill] sm:$0xff] }
 0x202   : > { %v1989_v24 = vpop.f32.mrf.mxu0 }
 0x203   : > { %v2406_v1 = vmax.f32 %v2274_v2, 0.0  ;;  %v1990_v36 = vadd.f32 %v1989_v24, %v4470_v50  ;;  %v2278_v21 = vpop.f32.mrf.mxu1 }
 0x204   : > { %v1991_v17 = vpop.f32.mrf.mxu0 }
 0x205   : > { %v4869_v26 = vpack.c.bf16 %v2406_v1, %v2405_v49  ;;  %v2279_v42 = vadd.f32 %v2278_v21, %v1990_v36  ;;  %v2280_v8 = vpop.f32.mrf.mxu1  ;;  %v5330_v36 = vld [vmem:[#allocation27_spill] sm:$0xff] }
 0x206   : > { %v1992_v11 = vpop.f32.mrf.mxu0 }
 0x207   : > { %v1993_v4 = vadd.f32 %v1992_v11, %v5324_v22  ;;  %v2281_v52 = vpop.f32.mrf.mxu1  ;;  %v2407_v57 = vmax.f32 %v2279_v42, 0.0 }
 0x208   : > { %v1994_v15 = vpop.f32.mrf.mxu0 }
 0x209   : > { %v2282_v18 = vadd.f32 %v2281_v52, %v1993_v4  ;;  %v2283_v6 = vpop.f32.mrf.mxu1  ;;  %v5331_v15 = vld [vmem:[#allocation24_spill] sm:$0xff] }
 0x20a   : > { %v1997_v48 = vpop.f32.mrf.mxu0 }
 0x20b   : > { %v2408_v28 = vmax.f32 %v2282_v18, 0.0  ;;  %v1998_v53 = vadd.f32 %v1997_v48, %v5325_v62  ;;  %v2286_v33 = vpop.f32.mrf.mxu1 }
 0x20c   : > { %v1999_v50 = vpop.f32.mrf.mxu0 }
 0x20d   : > { %v4873_v46 = vpack.c.bf16 %v2408_v28, %v2407_v57  ;;  %v2287_v19 = vadd.f32 %v2286_v33, %v1998_v53  ;;  %v2288_v56 = vpop.f32.mrf.mxu1  ;;  %v5332_v33 = vld [vmem:[#allocation25_spill] sm:$0xff] }
 0x20e   : > { %v2000_v23 = vpop.f32.mrf.mxu0 }
 0x20f   : > { %v2001_v13 = vadd.f32 %v2000_v23, %v5326_v51  ;;  %v2289_v43 = vpop.f32.mrf.mxu1  ;;  %v2409_v54 = vmax.f32 %v2287_v19, 0.0 }
 0x210   : > { %v2002_v63 = vpop.f32.mrf.mxu0 }
 0x211   : > { %v2290_v61 = vadd.f32 %v2289_v43, %v2001_v13  ;;  %v2291_v0 = vpop.f32.mrf.mxu1 }
 0x212   : > { %v2005_v39 = vpop.f32.mrf.mxu0 }
 0x213   : > { %v2410_v30 = vmax.f32 %v2290_v61, 0.0  ;;  %v2006_v12 = vadd.f32 %v2005_v39, %v5327_v29  ;;  %v2294_v16 = vpop.f32.mrf.mxu1 }
 0x214   : > { %v2007_v27 = vpop.f32.mrf.mxu0 }
 0x215   : > { %v4877_v20 = vpack.c.bf16 %v2410_v30, %v2409_v54  ;;  %v2295_v10 = vadd.f32 %v2294_v16, %v2006_v12  ;;  %v2296_v45 = vpop.f32.mrf.mxu1 }
 0x216   : > { %v2008_v9 = vpop.f32.mrf.mxu0 }
 0x217   : > { %v2009_v25 = vadd.f32 %v2008_v9, %v5328_v5  ;;  %v2297_v32 = vpop.f32.mrf.mxu1  ;;  %v2411_v60 = vmax.f32 %v2295_v10, 0.0 }
 0x218   : > { %v2010_v55 = vpop.f32.mrf.mxu0 }
 0x219   : > { %v2298_v3 = vadd.f32 %v2297_v32, %v2009_v25  ;;  %v2299_v31 = vpop.f32.mrf.mxu1 }
 0x21a   : > { %v2013_v59 = vpop.f32.mrf.mxu0 }
 0x21b   : > { %v2412_v38 = vmax.f32 %v2298_v3, 0.0  ;;  %v2014_v47 = vadd.f32 %v2013_v59, %v5329_v58  ;;  %v2302_v34 = vpop.f32.mrf.mxu1 }
 0x21c   : > { %v2015_v2 = vpop.f32.mrf.mxu0 }
 0x21d   : > { %v4881_v37 = vpack.c.bf16 %v2412_v38, %v2411_v60  ;;  %v2303_v24 = vadd.f32 %v2302_v34, %v2014_v47  ;;  %v2304_v49 = vpop.f32.mrf.mxu1 }
 0x21e   : > { %v2016_v1 = vpop.f32.mrf.mxu0 }
 0x21f   : > { %v2017_v21 = vadd.f32 %v2016_v1, %v5330_v36  ;;  %v2305_v17 = vpop.f32.mrf.mxu1  ;;  %v2413_v4 = vmax.f32 %v2303_v24, 0.0 }
 0x220   : > { %v2018_v42 = vpop.f32.mrf.mxu0 }
 0x221   : > { %v2306_v8 = vadd.f32 %v2305_v17, %v2017_v21  ;;  %v2307_v11 = vpop.f32.mrf.mxu1 }
 0x222   : > { %v2021_v22 = vpop.f32.mrf.mxu0 }
 0x223   : > { %v2414_v52 = vmax.f32 %v2306_v8, 0.0  ;;  %v2022_v18 = vadd.f32 %v2021_v22, %v5331_v15  ;;  %v2310_v6 = vpop.f32.mrf.mxu1 }
 0x224   : > { %v2023_v48 = vpop.f32.mrf.mxu0 }
 0x225   : > { %v4885_v57 = vpack.c.bf16 %v2414_v52, %v2413_v4  ;;  %v2311_v28 = vadd.f32 %v2310_v6, %v2022_v18  ;;  %v2312_v62 = vpop.f32.mrf.mxu1 }
 0x226   : > { %v2024_v53 = vpop.f32.mrf.mxu0 }
 0x227   : > { %v2025_v50 = vadd.f32 %v2024_v53, %v5332_v33  ;;  %v2313_v19 = vpop.f32.mrf.mxu1  ;;  %v2415_v43 = vmax.f32 %v2311_v28, 0.0  ;;  %v5333_v28 = vld [vmem:[#allocation12_spill] sm:$0xff]  ;;  %v5334_v53 = vld [vmem:[#allocation7_spill] sm:$0xff] }
 0x228   : > { %v2026_v56 = vpop.f32.mrf.mxu0 }
 0x229   : > { %v2314_v23 = vadd.f32 %v2313_v19, %v2025_v50  ;;  %v2315_v51 = vpop.f32.mrf.mxu1  ;;  %v5335_v56 = vld [vmem:[#allocation11_spill] sm:$0xff] }
 0x22a   : > { %v4888_v13 = vpop.f32.mrf.mxu0 }
 0x22b   : > { %v2416_v63 = vmax.f32 %v2314_v23, 0.0  ;;  %v4890_v61 = vpop.f32.mrf.mxu1 }
 0x22c   : > { %v2031_v0 = vpop.f32.mrf.mxu0 }
 0x22d   : > { %v4892_v39 = vpack.c.bf16 %v2416_v63, %v2415_v43  ;;  %v2320_v54 = vpop.f32.mrf.mxu1  ;;  %v5336_v63 = vld [vmem:[#allocation16_spill] sm:$0xff] }
 0x22e   : > { %v4894_v30 = vpop.f32.mrf.mxu0 }
 0x22f   : > { %v4896_v29 = vpop.f32.mrf.mxu1 }
 0x230   : > { %v2034_v12 = vpop.f32.mrf.mxu0 }
 0x231   : > { %v2323_v16 = vpop.f32.mrf.mxu1 }
 0x232   : > { %v4898_v27 = vpop.f32.mrf.mxu0  ;;  %v5337_v16 = vld [vmem:[#allocation8_spill] sm:$0xff] }
 0x233   : > { %v4900_v10 = vpop.f32.mrf.mxu1 }
 0x234   : > { %v2039_v45 = vpop.f32.mrf.mxu0 }
 0x235   : > { %v2328_v9 = vpop.f32.mrf.mxu1 }
 0x236   : > { %v2040_v5 = vpop.f32.mrf.mxu0 }
 0x237   : > { %v4902_v25 = vpop.f32.mrf.mxu1 }
 0x238   : > { %v2042_v32 = vpop.f32.mrf.mxu0 }
 0x239   : > { %v2331_v55 = vpop.f32.mrf.mxu1 }
 0x23a   : > { %v2045_v3 = vpop.f32.mrf.mxu0  ;;  %v5338_v55 = vld [vmem:[#allocation15_spill] sm:$0xff] }
 0x23b   : > { %v2334_v31 = vpop.f32.mrf.mxu1 }
 0x23c   : > { %v2047_v59 = vpop.f32.mrf.mxu0 }
 0x23d   : > { %v2336_v60 = vpop.f32.mrf.mxu1 }
 0x23e   : > { %v2048_v38 = vpop.f32.mrf.mxu0 }
 0x23f   : > { %v2337_v58 = vpop.f32.mrf.mxu1 }
 0x240   : > { %v2050_v47 = vpop.f32.mrf.mxu0 }
 0x241   : > { %v2339_v34 = vpop.f32.mrf.mxu1 }
 0x242   : > { %v2053_v2 = vpop.f32.mrf.mxu0 }
 0x243   : > { %v2342_v24 = vpop.f32.mrf.mxu1  ;;  %v2054_v59 = vadd.f32 %v2053_v2, %v5338_v55  ;;  %v5342_v2 = vld [vmem:[#allocation20_spill] sm:$0xff] }
 0x244   : > { %v2055_v49 = vpop.f32.mrf.mxu0 }
 0x245   : > { %v2344_v1 = vpop.f32.mrf.mxu1  ;;  %v5339_v49 = vld [vmem:[#allocation19_spill] sm:$0xff] }
 0x246   : > { %v2056_v36 = vpop.f32.mrf.mxu0  ;;  %v2049_v1 = vadd.f32 %v2048_v38, %v5339_v49  ;;  %v2038_v38 = vadd.f32 %v4898_v27, %v5342_v2  ;;  %v3567_v2 = vld [vmem:[%s3956_s16 + $0x48] sm:$0xff] }
 0x247   : > { %v2345_v21 = vpop.f32.mrf.mxu1  ;;  %v2057_v0 = vadd.f32 %v2056_v36, %v5336_v63  ;;  %v2343_v36 = vadd.f32 %v2342_v24, %v2054_v59  ;;  %v2589_v59 = vsub.s32 0, %v4847_v7 }
 0x248   : > { %v2058_v17 = vpop.f32.mrf.mxu0 }
 0x249   : > { %v2347_v42 = vpop.f32.mrf.mxu1  ;;  %v2346_v17 = vadd.f32 %v2345_v21, %v2057_v0  ;;  %v2575_v0 = vstv %s3240_s11 }
 0x24a   : > { %v2061_v8 = vpop.f32.mrf.mxu0 }
 0x24b   : > { %v2350_v11 = vpop.f32.mrf.mxu1  ;;  %v2062_v23 = vadd.f32 %v2061_v8, %v5335_v56 }
 0x24c   : > { %v2063_v22 = vpop.f32.mrf.mxu0 }
 0x24d   : > { %v2352_v4 = vpop.f32.mrf.mxu1  ;;  %v2351_v60 = vadd.f32 %v2350_v11, %v2062_v23  ;;  %v2423_v11 = vmax.f32 %v2343_v36, 0.0  ;;  %v3563_v36 = vld [vmem:[%s3956_s16 + $0x28] sm:$0xff] }
 0x24e   : > { %v2064_v52 = vpop.f32.mrf.mxu0  ;;  %v5340_v4 = vld [vmem:[#allocation18_spill] sm:$0xff] }
 0x24f   : > { %v2353_v15 = vpop.f32.mrf.mxu1  ;;  %v2065_v62 = vadd.f32 %v2064_v52, %v5333_v28  ;;  %v2046_v52 = vadd.f32 %v2045_v3, %v5340_v4  ;;  %v2338_v28 = vadd.f32 %v2337_v58, %v2049_v1  ;;  %v3559_v1 = vld [vmem:[%s3956_s16 + $0x8] sm:$0xff]  ;;  %v3562_v4 = vld [vmem:[%s3956_s16 + $0x20] sm:$0xff] }
 0x250   : > { %v2066_v18 = vpop.f32.mrf.mxu0 }
 0x251   : > { %v2355_v6 = vpop.f32.mrf.mxu1  ;;  %v2354_v54 = vadd.f32 %v2353_v15, %v2065_v62  ;;  %v2425_v15 = vmax.f32 %v2351_v60, 0.0  ;;  %v2424_v62 = vmax.f32 %v2346_v17, 0.0  ;;  %v2335_v21 = vadd.f32 %v2334_v31, %v2046_v52 }
 0x252   : > { %v2069_v48 = vpop.f32.mrf.mxu0  ;;  %v5341_v6 = vld [vmem:[#allocation21_spill] sm:$0xff] }
 0x253   : > { %v2070_v33 = vadd.f32 %v2069_v48, %v5334_v53  ;;  %v2358_v50 = vpop.f32.mrf.mxu1  ;;  %v2426_v42 = vmax.f32 %v2354_v54, 0.0  ;;  %v2041_v48 = vadd.f32 %v2040_v5, %v5341_v6  ;;  %v5344_v5 = vld [vmem:[#allocation22_spill] sm:$0xff]  ;;  %v2421_v56 = vmax.f32 %v2335_v21, 0.0  ;;  %v3568_v21 = vld [vmem:[%s3956_s16 + $0x50] sm:$0xff] }
 0x254   : > { %v2071_v19 = vpop.f32.mrf.mxu0  ;;  %v2030_v58 = vadd.f32 %v4888_v13, %v5344_v5  ;;  %v2572_v54 = vstv %s2571_s12 }
 0x255   : > { %v2360_v51 = vpop.f32.mrf.mxu1  ;;  %v2359_v12 = vadd.f32 %v2358_v50, %v2070_v33  ;;  %v2460_v53 = vpack.c.bf16 %v2426_v42, %v2425_v15  ;;  %v5343_v33 = vld [vmem:[#allocation23_spill] sm:$0xff]  ;;  %v2330_v24 = vadd.f32 %v4902_v25, %v2041_v48  ;;  %v2422_v50 = vmax.f32 %v2338_v28, 0.0  ;;  %v3560_v42 = vld [vmem:[%s3956_s16 + $0x10] sm:$0xff]  ;;  %v3565_v48 = vld [vmem:[%s3956_s16 + $0x38] sm:$0xff] }
 0x256   : > { %v2072_v43 = vpop.f32.mrf.mxu0  ;;  %v2033_v3 = vadd.f32 %v4894_v30, %v5343_v33  ;;  %v2459_v19 = vpack.c.bf16 %v2424_v62, %v2423_v11  ;;  %v2319_v30 = vadd.f32 %v4890_v61, %v2030_v58  ;;  %v3566_v62 = vld [vmem:[%s3956_s16 + $0x40] sm:$0xff]  ;;  %v3569_v33 = vld [vmem:[%s3956_s16 + $0x58] sm:$0xff]  ;;  %v3572_v58 = vld [vmem:[%s3956_s16 + $0x70] sm:$0xff] }
 0x257   : > { %v2073_v45 = vadd.f32 %v2072_v43, %v5337_v16  ;;  %v2361_v9 = vpop.f32.mrf.mxu1  ;;  %v2427_v8 = vmax.f32 %v2359_v12, 0.0  ;;  %v2420_v31 = vmax.f32 %v2330_v24, 0.0  ;;  %v2458_v23 = vpack.c.bf16 %v2422_v50, %v2421_v56  ;;  %v3570_v24 = vld [vmem:[%s3956_s16 + $0x60] sm:$0xff]  ;;  %v3573_v56 = vld [vmem:[%s3956_s16 + $0x78] sm:$0xff] }
 0x258   : > { %v2074_v32 = vpop.f32.mrf.mxu0  ;;  %v2322_v27 = vadd.f32 %v4896_v29, %v2033_v3 }
 0x259   : > { %v2362_v47 = vadd.f32 %v2361_v9, %v2073_v45  ;;  %v2363_v34 = vpop.f32.mrf.mxu1 }
 0x25a   : > { %v2418_v51 = vmax.f32 %v2322_v27, 0.0  ;;  %v3558_v34 = vld [vmem:[%s3956_s16] sm:$0xff] }
 0x25b   : > { %v2428_v22 = vmax.f32 %v2362_v47, 0.0 }
 0x25d   : > { %v2461_v18 = vpack.c.bf16 %v2428_v22, %v2427_v8  ;;  %v3561_v22 = vld [vmem:[%s3956_s16 + $0x18] sm:$0xff] }
 0x25f   : > { %3269 = vmatprep.subr.bf16.mxu1 %v2461_v18  ;;  %v3564_v18 = vld [vmem:[%s3956_s16 + $0x30] sm:$0xff] }
 0x260   : > { %3270 = vmatpush3.bf16.msra.mxu1 %v4881_v37  ;;  %v2327_v37 = vadd.f32 %v4900_v10, %v2038_v38 }
 0x261   : > { %3271 = vmatprep.subr.bf16.mxu1 %v2460_v53 }
 0x262   : > { %v2419_v25 = vmax.f32 %v2327_v37, 0.0 }
 0x264   : > { %3272 = vmatpush3.bf16.msra.mxu1 %v4877_v20  ;;  %v2457_v43 = vpack.c.bf16 %v2420_v31, %v2419_v25  ;;  %v2417_v20 = vmax.f32 %v2319_v30, 0.0  ;;  %v3574_v31 = vld [vmem:[%s3956_s16 + $0x80] sm:$0xff]  ;;  %v3575_v30 = vld [vmem:[%s3956_s16 + $0x88] sm:$0xff] }
 0x265   : > { %3273 = vmatprep.subr.bf16.mxu1 %v2459_v19  ;;  %v3571_v19 = vld [vmem:[%s3956_s16 + $0x68] sm:$0xff] }
 0x266   : > { %v2456_v13 = vpack.c.bf16 %v2418_v51, %v2417_v20  ;;  %v3576_v51 = vld [vmem:[%s3956_s16 + $0x90] sm:$0xff]  ;;  %v3577_v20 = vld [vmem:[%s3956_s16 + $0x98] sm:$0xff] }
 0x268   : > { %3274 = vmatpush3.bf16.msra.mxu1 %v4873_v46  ;;  %v2485_v46 = vcombine.high %v4861_v40, %v4861_v40 }
 0x269   : > { %3275 = vmatprep.subr.bf16.mxu1 %v2458_v23 }
 0x26c   : > { %3276 = vmatpush3.bf16.msra.mxu1 %v4869_v26 }
 0x26d   : > { %3277 = vmatprep.subr.bf16.mxu1 %v2457_v43 }
 0x270   : > { %3278 = vmatpush3.bf16.msra.mxu1 %v4864_v44 }
 0x271   : > { %3279 = vmatprep.subr.bf16.mxu1 %v2456_v13 }
 0x274   : > { %3280 = vmatpush3.bf16.msra.mxu1 %v4853_v35 }
 0x275   : > { %3281 = vmatprep.subr.bf16.mxu1 %v4892_v39 }
 0x278   : > { %3282 = vmatpush3.bf16.msra.mxu1 %v4842_v41 }
 0x279   : > { %3283 = vmatprep.subr.bf16.mxu1 %v4885_v57 }
 0x27c   : > { %3284 = vmatpush3.bf16.msra.mxu1 %v4833_v14 }
 0x27f   : > { %2564 = vmatmul.mubr.bf16.vlgmr.msra.gmra.mxu1 %v2485_v46  ;;  %v3578_v46 = vld [vmem:[%s3956_s16 + $0xa0] sm:$0xff] }
 0x2bf   : > { %v3263_v26 = vpop.f32.mrf.mxu0 }
 0x2c1   : > { %v3264_v61 = vpop.f32.mrf.mxu0 }
 0x2c2   : > { %v3265_v29 = vadd.f32 %v3264_v61, %v3263_v26  ;;  %v3579_v61 = vld [vmem:[%s3956_s16 + $0xa8] sm:$0xff] }
 0x2c3   : > { %v3266_v10 = vpop.f32.mrf.mxu0 }
 0x2c4   : > { %v3580_v10 = vld [vmem:[%s3956_s16 + $0xb0] sm:$0xff] }
 0x2c5   : > { %v3267_v44 = vpop.f32.mrf.mxu0 }
 0x33f   : > { %v3285_v35 = vpop.f32.mrf.mxu1 }
 0x341   : > { %v3286_v63 = vpop.f32.mrf.mxu1 }
 0x342   : > { %v3287_v39 = vadd.f32 %v3286_v63, %v3285_v35  ;;  %v3581_v35 = vld [vmem:[%s3956_s16 + $0xb8] sm:$0xff] }
 0x343   : > { %v3288_v41 = vpop.f32.mrf.mxu1 }
 0x344   : > { %v2566_v57 = vadd.f32 %v3287_v39, %v3265_v29  ;;  %v3582_v39 = vld [vmem:[%s3956_s16 + $0xc0] sm:$0xff]  ;;  %v3583_v41 = vld [vmem:[%s3956_s16 + $0xc8] sm:$0xff] }
 0x345   : > { %v3289_v40 = vpop.f32.mrf.mxu1 }
 0x346   : > { %v2576_v12 = vadd.f32 %v2575_v0, %v2566_v57  ;;  %v2573_v14 = vadd.f32 %v2572_v54, %v2566_v57  ;;  %v3584_v54 = vld [vmem:[%s3956_s16 + $0xd0] sm:$0xff] }
 0x348   : > { %v2578_v16 = vrot.slane %v2576_v12, 1  ;;  %v3585_v12 = vld [vmem:[%s3956_s16 + $0xd8] sm:$0xff] }
 0x34a   : > { %v2580_v45 = vmax.f32 %v2573_v14, %v2578_v16  ;;  %v3586_v16 = vld [vmem:[%s3956_s16 + $0xe0] sm:$0xff] }
 0x34c   : > { %v3241_v9 = vmul.f32 -1.442695, %v2580_v45 }
 0x34e   : > { %3554 = vpow2.f32 %v3241_v9  ;;  %v3587_v9 = vld [vmem:[%s3956_s16 + $0xe8] sm:$0xff] }
 0x35b   : > { %v3555_v32 = vpop.eup %3554 }
 0x35c   : > { %v2584_v55 = vadd.f32 1.0, %v3555_v32 }
 0x35e   : > { %3556 = vrcp.f32 %v2584_v55  ;;  %v3588_v55 = vld [vmem:[%s3956_s16 + $0xf0] sm:$0xff] }
 0x36b   : > { %v3557_v60 = vpop.eup %3556 }
 0x36c   : > { %v4936_v47 = vrot.slane %v3557_v60, %v2589_v59  ;;  %v3589_v60 = vld [vmem:[%s3956_s16 + $0xf8] sm:$0xff] }
 0x36e   : > { %v2591_v49 = vmul.f32 %v3558_v34, %v4936_v47  ;;  %v2592_v17 = vmul.f32 %v3559_v1, %v4936_v47  ;;  %v2593_v8 = vmul.f32 %v3560_v42, %v4936_v47  ;;  %v2594_v7 = vmul.f32 %v3561_v22, %v4936_v47 }
 0x36f   : > { %v2595_v52 = vmul.f32 %v3562_v4, %v4936_v47  ;;  %v2596_v15 = vmul.f32 %v3563_v36, %v4936_v47  ;;  %v2597_v6 = vmul.f32 %v3564_v18, %v4936_v47  ;;  %v2598_v28 = vmul.f32 %v3565_v48, %v4936_v47 }
 0x370   : > { %v2599_v53 = vmul.f32 %v3566_v62, %v4936_v47  ;;  %v2600_v38 = vmul.f32 %v3567_v2, %v4936_v47  ;;  %v2601_v11 = vmul.f32 %v3568_v21, %v4936_v47  ;;  %v2602_v3 = vmul.f32 %v3569_v33, %v4936_v47  ;;  %2655 = vst [vmem:[%s4963_s30] sm:$0xff] %v2591_v49  ;;  %v3590_v49 = vld [vmem:[%s3956_s16 + $0x100] sm:$0xff] }
 0x371   : > { %2656 = vst [vmem:[%s4963_s30 + $0x8] sm:$0xff] %v2592_v17  ;;  %2657 = vst [vmem:[%s4963_s30 + $0x10] sm:$0xff] %v2593_v8  ;;  %v2603_v50 = vmul.f32 %v3570_v24, %v4936_v47  ;;  %v2604_v5 = vmul.f32 %v3571_v19, %v4936_v47  ;;  %v2605_v37 = vmul.f32 %v3572_v58, %v4936_v47  ;;  %v3591_v17 = vld [vmem:[%s3956_s16 + $0x108] sm:$0xff]  ;;  %v3592_v8 = vld [vmem:[%s3956_s16 + $0x110] sm:$0xff] }
 0x372   : > { %2658 = vst [vmem:[%s4963_s30 + $0x18] sm:$0xff] %v2594_v7  ;;  %v2606_v27 = vmul.f32 %v3573_v56, %v4936_v47  ;;  %2659 = vst [vmem:[%s4963_s30 + $0x20] sm:$0xff] %v2595_v52  ;;  %v2607_v23 = vmul.f32 %v3574_v31, %v4936_v47  ;;  %v2608_v25 = vmul.f32 %v3575_v30, %v4936_v47  ;;  %v3593_v7 = vld [vmem:[%s3956_s16 + $0x118] sm:$0xff]  ;;  %v3594_v52 = vld [vmem:[%s3956_s16 + $0x120] sm:$0xff] }
 0x373   : > { %2660 = vst [vmem:[%s4963_s30 + $0x28] sm:$0xff] %v2596_v15  ;;  %2661 = vst [vmem:[%s4963_s30 + $0x30] sm:$0xff] %v2597_v6  ;;  %v2609_v43 = vmul.f32 %v3576_v51, %v4936_v47  ;;  %v2610_v13 = vmul.f32 %v3577_v20, %v4936_v47  ;;  %v2611_v26 = vmul.f32 %v3578_v46, %v4936_v47  ;;  %v3595_v15 = vld [vmem:[%s3956_s16 + $0x128] sm:$0xff]  ;;  %v3596_v6 = vld [vmem:[%s3956_s16 + $0x130] sm:$0xff] }
 0x374   : > { %2662 = vst [vmem:[%s4963_s30 + $0x38] sm:$0xff] %v2598_v28  ;;  %2663 = vst [vmem:[%s4963_s30 + $0x40] sm:$0xff] %v2599_v53  ;;  %v2612_v29 = vmul.f32 %v3579_v61, %v4936_v47  ;;  %v2613_v44 = vmul.f32 %v3580_v10, %v4936_v47  ;;  %v2614_v63 = vmul.f32 %v3581_v35, %v4936_v47  ;;  %v3597_v28 = vld [vmem:[%s3956_s16 + $0x138] sm:$0xff]  ;;  %v3598_v53 = vld [vmem:[%s3956_s16 + $0x140] sm:$0xff] }
 0x375   : > { %2664 = vst [vmem:[%s4963_s30 + $0x48] sm:$0xff] %v2600_v38  ;;  %2665 = vst [vmem:[%s4963_s30 + $0x50] sm:$0xff] %v2601_v11  ;;  %v2615_v0 = vmul.f32 %v3582_v39, %v4936_v47  ;;  %v2616_v57 = vmul.f32 %v3583_v41, %v4936_v47  ;;  %v2617_v40 = vmul.f32 %v3584_v54, %v4936_v47  ;;  %v3599_v38 = vld [vmem:[%s3956_s16 + $0x148] sm:$0xff]  ;;  %v3600_v11 = vld [vmem:[%s3956_s16 + $0x150] sm:$0xff] }
 0x376   : > { %2666 = vst [vmem:[%s4963_s30 + $0x58] sm:$0xff] %v2602_v3  ;;  %2667 = vst [vmem:[%s4963_s30 + $0x60] sm:$0xff] %v2603_v50  ;;  %v2618_v14 = vmul.f32 %v3585_v12, %v4936_v47  ;;  %v2619_v45 = vmul.f32 %v3586_v16, %v4936_v47  ;;  %v2620_v32 = vmul.f32 %v3587_v9, %v4936_v47  ;;  %v3601_v3 = vld [vmem:[%s3956_s16 + $0x158] sm:$0xff]  ;;  %v3602_v50 = vld [vmem:[%s3956_s16 + $0x160] sm:$0xff] }
 0x377   : > { %2668 = vst [vmem:[%s4963_s30 + $0x68] sm:$0xff] %v2604_v5  ;;  %2669 = vst [vmem:[%s4963_s30 + $0x70] sm:$0xff] %v2605_v37  ;;  %v2621_v59 = vmul.f32 %v3588_v55, %v4936_v47  ;;  %v2622_v34 = vmul.f32 %v3589_v60, %v4936_v47  ;;  %v2623_v1 = vmul.f32 %v3590_v49, %v4936_v47  ;;  %v3603_v5 = vld [vmem:[%s3956_s16 + $0x168] sm:$0xff]  ;;  %v3604_v37 = vld [vmem:[%s3956_s16 + $0x170] sm:$0xff] }
 0x378   : > { %2670 = vst [vmem:[%s4963_s30 + $0x78] sm:$0xff] %v2606_v27  ;;  %2671 = vst [vmem:[%s4963_s30 + $0x80] sm:$0xff] %v2607_v23  ;;  %v2624_v42 = vmul.f32 %v3591_v17, %v4936_v47  ;;  %v2625_v22 = vmul.f32 %v3592_v8, %v4936_v47  ;;  %v2626_v4 = vmul.f32 %v3593_v7, %v4936_v47  ;;  %v3605_v27 = vld [vmem:[%s3956_s16 + $0x178] sm:$0xff]  ;;  %v3606_v23 = vld [vmem:[%s3956_s16 + $0x180] sm:$0xff] }
 0x379   : > { %2672 = vst [vmem:[%s4963_s30 + $0x88] sm:$0xff] %v2608_v25  ;;  %2673 = vst [vmem:[%s4963_s30 + $0x90] sm:$0xff] %v2609_v43  ;;  %v2627_v36 = vmul.f32 %v3594_v52, %v4936_v47  ;;  %v2628_v18 = vmul.f32 %v3595_v15, %v4936_v47  ;;  %v2629_v48 = vmul.f32 %v3596_v6, %v4936_v47  ;;  %v3607_v25 = vld [vmem:[%s3956_s16 + $0x188] sm:$0xff]  ;;  %v3608_v43 = vld [vmem:[%s3956_s16 + $0x190] sm:$0xff] }
 0x37a   : > { %2674 = vst [vmem:[%s4963_s30 + $0x98] sm:$0xff] %v2610_v13  ;;  %2675 = vst [vmem:[%s4963_s30 + $0xa0] sm:$0xff] %v2611_v26  ;;  %v2630_v62 = vmul.f32 %v3597_v28, %v4936_v47  ;;  %v2631_v2 = vmul.f32 %v3598_v53, %v4936_v47  ;;  %v2632_v21 = vmul.f32 %v3599_v38, %v4936_v47  ;;  %v3609_v13 = vld [vmem:[%s3956_s16 + $0x198] sm:$0xff]  ;;  %v3610_v26 = vld [vmem:[%s3956_s16 + $0x1a0] sm:$0xff] }
 0x37b   : > { %2676 = vst [vmem:[%s4963_s30 + $0xa8] sm:$0xff] %v2612_v29  ;;  %2677 = vst [vmem:[%s4963_s30 + $0xb0] sm:$0xff] %v2613_v44  ;;  %v2633_v33 = vmul.f32 %v3600_v11, %v4936_v47  ;;  %v2634_v24 = vmul.f32 %v3601_v3, %v4936_v47  ;;  %v2635_v19 = vmul.f32 %v3602_v50, %v4936_v47  ;;  %v3611_v29 = vld [vmem:[%s3956_s16 + $0x1a8] sm:$0xff]  ;;  %v3612_v44 = vld [vmem:[%s3956_s16 + $0x1b0] sm:$0xff] }
 0x37c   : > { %2678 = vst [vmem:[%s4963_s30 + $0xb8] sm:$0xff] %v2614_v63  ;;  %2679 = vst [vmem:[%s4963_s30 + $0xc0] sm:$0xff] %v2615_v0  ;;  %v2636_v58 = vmul.f32 %v3603_v5, %v4936_v47  ;;  %v2637_v56 = vmul.f32 %v3604_v37, %v4936_v47  ;;  %v2638_v31 = vmul.f32 %v3605_v27, %v4936_v47  ;;  %v3613_v63 = vld [vmem:[%s3956_s16 + $0x1b8] sm:$0xff]  ;;  %v3614_v0 = vld [vmem:[%s3956_s16 + $0x1c0] sm:$0xff] }
 0x37d   : > { %2680 = vst [vmem:[%s4963_s30 + $0xc8] sm:$0xff] %v2616_v57  ;;  %2681 = vst [vmem:[%s4963_s30 + $0xd0] sm:$0xff] %v2617_v40  ;;  %v2639_v30 = vmul.f32 %v3606_v23, %v4936_v47  ;;  %v2640_v51 = vmul.f32 %v3607_v25, %v4936_v47  ;;  %v2641_v20 = vmul.f32 %v3608_v43, %v4936_v47  ;;  %v3615_v57 = vld [vmem:[%s3956_s16 + $0x1c8] sm:$0xff]  ;;  %v3616_v40 = vld [vmem:[%s3956_s16 + $0x1d0] sm:$0xff] }
 0x37e   : > { %2682 = vst [vmem:[%s4963_s30 + $0xd8] sm:$0xff] %v2618_v14  ;;  %2683 = vst [vmem:[%s4963_s30 + $0xe0] sm:$0xff] %v2619_v45  ;;  %v2642_v46 = vmul.f32 %v3609_v13, %v4936_v47  ;;  %v2643_v61 = vmul.f32 %v3610_v26, %v4936_v47  ;;  %v2644_v10 = vmul.f32 %v3611_v29, %v4936_v47  ;;  %v3617_v14 = vld [vmem:[%s3956_s16 + $0x1d8] sm:$0xff]  ;;  %v3618_v45 = vld [vmem:[%s3956_s16 + $0x1e0] sm:$0xff] }
 0x37f   : > { %2684 = vst [vmem:[%s4963_s30 + $0xe8] sm:$0xff] %v2620_v32  ;;  %2685 = vst [vmem:[%s4963_s30 + $0xf0] sm:$0xff] %v2621_v59  ;;  %v2645_v35 = vmul.f32 %v3612_v44, %v4936_v47  ;;  %v2646_v39 = vmul.f32 %v3613_v63, %v4936_v47  ;;  %v2647_v41 = vmul.f32 %v3614_v0, %v4936_v47  ;;  %v3619_v32 = vld [vmem:[%s3956_s16 + $0x1e8] sm:$0xff]  ;;  %v3620_v59 = vld [vmem:[%s3956_s16 + $0x1f0] sm:$0xff] }
 0x380   : > { %2686 = vst [vmem:[%s4963_s30 + $0xf8] sm:$0xff] %v2622_v34  ;;  %2687 = vst [vmem:[%s4963_s30 + $0x100] sm:$0xff] %v2623_v1  ;;  %v2648_v54 = vmul.f32 %v3615_v57, %v4936_v47  ;;  %v2649_v12 = vmul.f32 %v3616_v40, %v4936_v47  ;;  %v2650_v16 = vmul.f32 %v3617_v14, %v4936_v47  ;;  %v3621_v34 = vld [vmem:[%s3956_s16 + $0x1f8] sm:$0xff]  ;;  %v2886_v1 = vld [vmem:[%s4963_s30 + $0x8] sm:$0xff] (%p5345_p7)  ;;  %s3244_s16 = sshll.u32 (%p5345_p7), %s2727_s6, 3 }
 0x381   : > { %2688 = vst [vmem:[%s4963_s30 + $0x108] sm:$0xff] %v2624_v42  ;;  %2689 = vst [vmem:[%s4963_s30 + $0x110] sm:$0xff] %v2625_v22  ;;  %v2651_v9 = vmul.f32 %v3618_v45, %v4936_v47  ;;  %v2652_v55 = vmul.f32 %v3619_v32, %v4936_v47  ;;  %v2653_v60 = vmul.f32 %v3620_v59, %v4936_v47  ;;  %v2888_v17 = vld [vmem:[%s4963_s30 + $0x10] sm:$0xff] (%p5345_p7)  ;;  %v2890_v42 = vld [vmem:[%s4963_s30 + $0x18] sm:$0xff] (%p5345_p7)  ;;  %s5149_s9 = scalar_lea.vmem (%p5345_p7), %s5296_s5, %s3244_s16 }
 0x382   : > { %2690 = vst [vmem:[%s4963_s30 + $0x118] sm:$0xff] %v2626_v4  ;;  %2691 = vst [vmem:[%s4963_s30 + $0x120] sm:$0xff] %v2627_v36  ;;  %v2654_v49 = vmul.f32 %v3621_v34, %v4936_v47  ;;  %v2884_v47 = vld [vmem:[%s4963_s30] sm:$0xff] (%p5345_p7)  ;;  %v2894_v22 = vld [vmem:[%s4963_s30 + $0x28] sm:$0xff] (%p5345_p7) }
 0x383   : > { %2692 = vst [vmem:[%s4963_s30 + $0x128] sm:$0xff] %v2628_v18  ;;  %2693 = vst [vmem:[%s4963_s30 + $0x130] sm:$0xff] %v2629_v48  ;;  %v2892_v8 = vld [vmem:[%s4963_s30 + $0x20] sm:$0xff] (%p5345_p7)  ;;  %v2896_v7 = vld [vmem:[%s4963_s30 + $0x30] sm:$0xff] (%p5345_p7) }
 0x384   : > { %2694 = vst [vmem:[%s4963_s30 + $0x138] sm:$0xff] %v2630_v62  ;;  %2695 = vst [vmem:[%s4963_s30 + $0x140] sm:$0xff] %v2631_v2  ;;  %v2898_v4 = vld [vmem:[%s4963_s30 + $0x38] sm:$0xff] (%p5345_p7)  ;;  %v2900_v52 = vld [vmem:[%s4963_s30 + $0x40] sm:$0xff] (%p5345_p7) }
 0x385   : > { %2696 = vst [vmem:[%s4963_s30 + $0x148] sm:$0xff] %v2632_v21  ;;  %2697 = vst [vmem:[%s4963_s30 + $0x150] sm:$0xff] %v2633_v33  ;;  %v2902_v36 = vld [vmem:[%s4963_s30 + $0x48] sm:$0xff] (%p5345_p7)  ;;  %v2904_v15 = vld [vmem:[%s4963_s30 + $0x50] sm:$0xff] (%p5345_p7) }
 0x386   : > { %2698 = vst [vmem:[%s4963_s30 + $0x158] sm:$0xff] %v2634_v24  ;;  %2699 = vst [vmem:[%s4963_s30 + $0x160] sm:$0xff] %v2635_v19  ;;  %v2906_v18 = vld [vmem:[%s4963_s30 + $0x58] sm:$0xff] (%p5345_p7)  ;;  %v2908_v6 = vld [vmem:[%s4963_s30 + $0x60] sm:$0xff] (%p5345_p7) }
 0x387   : > { %2700 = vst [vmem:[%s4963_s30 + $0x168] sm:$0xff] %v2636_v58  ;;  %2701 = vst [vmem:[%s4963_s30 + $0x170] sm:$0xff] %v2637_v56  ;;  %v2910_v48 = vld [vmem:[%s4963_s30 + $0x68] sm:$0xff] (%p5345_p7)  ;;  %v2912_v28 = vld [vmem:[%s4963_s30 + $0x70] sm:$0xff] (%p5345_p7) }
 0x388   : > { %2702 = vst [vmem:[%s4963_s30 + $0x178] sm:$0xff] %v2638_v31  ;;  %2703 = vst [vmem:[%s4963_s30 + $0x180] sm:$0xff] %v2639_v30  ;;  %v2914_v62 = vld [vmem:[%s4963_s30 + $0x78] sm:$0xff] (%p5345_p7)  ;;  %v2916_v53 = vld [vmem:[%s4963_s30 + $0x80] sm:$0xff] (%p5345_p7) }
 0x389   : > { %2704 = vst [vmem:[%s4963_s30 + $0x188] sm:$0xff] %v2640_v51  ;;  %2705 = vst [vmem:[%s4963_s30 + $0x190] sm:$0xff] %v2641_v20  ;;  %v2918_v2 = vld [vmem:[%s4963_s30 + $0x88] sm:$0xff] (%p5345_p7)  ;;  %v2920_v38 = vld [vmem:[%s4963_s30 + $0x90] sm:$0xff] (%p5345_p7) }
 0x38a   : > { %2706 = vst [vmem:[%s4963_s30 + $0x198] sm:$0xff] %v2642_v46  ;;  %2707 = vst [vmem:[%s4963_s30 + $0x1a0] sm:$0xff] %v2643_v61  ;;  %v2922_v21 = vld [vmem:[%s4963_s30 + $0x98] sm:$0xff] (%p5345_p7)  ;;  %v2924_v11 = vld [vmem:[%s4963_s30 + $0xa0] sm:$0xff] (%p5345_p7) }
 0x38b   : > { %2708 = vst [vmem:[%s4963_s30 + $0x1a8] sm:$0xff] %v2644_v10  ;;  %2709 = vst [vmem:[%s4963_s30 + $0x1b0] sm:$0xff] %v2645_v35  ;;  %v2926_v33 = vld [vmem:[%s4963_s30 + $0xa8] sm:$0xff] (%p5345_p7)  ;;  %v2928_v3 = vld [vmem:[%s4963_s30 + $0xb0] sm:$0xff] (%p5345_p7) }
 0x38c   : > { %2710 = vst [vmem:[%s4963_s30 + $0x1b8] sm:$0xff] %v2646_v39  ;;  %2711 = vst [vmem:[%s4963_s30 + $0x1c0] sm:$0xff] %v2647_v41  ;;  %2725 = sbr.rel (!%p5345_p7) target bundleno = 945 (0x3b1), region = 86  ;;  %v2930_v24 = vld [vmem:[%s4963_s30 + $0xb8] sm:$0xff] (%p5345_p7)  ;;  %v2932_v50 = vld [vmem:[%s4963_s30 + $0xc0] sm:$0xff] (%p5345_p7) }
 0x38d   : > { %2712 = vst [vmem:[%s4963_s30 + $0x1c8] sm:$0xff] %v2648_v54  ;;  %2713 = vst [vmem:[%s4963_s30 + $0x1d0] sm:$0xff] %v2649_v12  ;;  %v2934_v19 = vld [vmem:[%s4963_s30 + $0xc8] sm:$0xff] (%p5345_p7)  ;;  %v2936_v5 = vld [vmem:[%s4963_s30 + $0xd0] sm:$0xff] (%p5345_p7) }
 0x38e   : > { %2714 = vst [vmem:[%s4963_s30 + $0x1d8] sm:$0xff] %v2650_v16  ;;  %2715 = vst [vmem:[%s4963_s30 + $0x1e0] sm:$0xff] %v2651_v9  ;;  %v2938_v58 = vld [vmem:[%s4963_s30 + $0xd8] sm:$0xff] (%p5345_p7)  ;;  %v2940_v37 = vld [vmem:[%s4963_s30 + $0xe0] sm:$0xff] (%p5345_p7) }
 0x38f   : > { %2716 = vst [vmem:[%s4963_s30 + $0x1e8] sm:$0xff] %v2652_v55  ;;  %2717 = vst [vmem:[%s4963_s30 + $0x1f0] sm:$0xff] %v2653_v60  ;;  %v2942_v56 = vld [vmem:[%s4963_s30 + $0xe8] sm:$0xff] (%p5345_p7)  ;;  %v2944_v27 = vld [vmem:[%s4963_s30 + $0xf0] sm:$0xff] (%p5345_p7) }
 0x390   : > { %2718 = vst [vmem:[%s4963_s30 + $0x1f8] sm:$0xff] %v2654_v49  ;;  %2885 = vst [vmem:[%s5149_s9] sm:$0xff] (%p5345_p7), %v2884_v47  ;;  %v2946_v31 = vld [vmem:[%s4963_s30 + $0xf8] sm:$0xff] (%p5345_p7)  ;;  %v2948_v23 = vld [vmem:[%s4963_s30 + $0x100] sm:$0xff] (%p5345_p7) }
 0x391   : > { %2887 = vst [vmem:[%s5149_s9 + $0x10] sm:$0xff] %v2886_v1  ;;  %2889 = vst [vmem:[%s5149_s9 + $0x20] sm:$0xff] %v2888_v17  ;;  %v2950_v30 = vld [vmem:[%s4963_s30 + $0x108] sm:$0xff]  ;;  %v2952_v25 = vld [vmem:[%s4963_s30 + $0x110] sm:$0xff] }
 0x392   : > { %2891 = vst [vmem:[%s5149_s9 + $0x30] sm:$0xff] %v2890_v42  ;;  %2893 = vst [vmem:[%s5149_s9 + $0x40] sm:$0xff] %v2892_v8  ;;  %v2954_v51 = vld [vmem:[%s4963_s30 + $0x118] sm:$0xff]  ;;  %v2956_v43 = vld [vmem:[%s4963_s30 + $0x120] sm:$0xff] }
 0x393   : > { %2895 = vst [vmem:[%s5149_s9 + $0x50] sm:$0xff] %v2894_v22  ;;  %2897 = vst [vmem:[%s5149_s9 + $0x60] sm:$0xff] %v2896_v7  ;;  %v2958_v20 = vld [vmem:[%s4963_s30 + $0x128] sm:$0xff]  ;;  %v2960_v13 = vld [vmem:[%s4963_s30 + $0x130] sm:$0xff] }
 0x394   : > { %2899 = vst [vmem:[%s5149_s9 + $0x70] sm:$0xff] %v2898_v4  ;;  %2901 = vst [vmem:[%s5149_s9 + $0x80] sm:$0xff] %v2900_v52  ;;  %v2962_v46 = vld [vmem:[%s4963_s30 + $0x138] sm:$0xff]  ;;  %v2964_v26 = vld [vmem:[%s4963_s30 + $0x140] sm:$0xff] }
 0x395   : > { %2903 = vst [vmem:[%s5149_s9 + $0x90] sm:$0xff] %v2902_v36  ;;  %2905 = vst [vmem:[%s5149_s9 + $0xa0] sm:$0xff] %v2904_v15  ;;  %v2966_v61 = vld [vmem:[%s4963_s30 + $0x148] sm:$0xff]  ;;  %v2968_v29 = vld [vmem:[%s4963_s30 + $0x150] sm:$0xff] }
 0x396   : > { %2907 = vst [vmem:[%s5149_s9 + $0xb0] sm:$0xff] %v2906_v18  ;;  %2909 = vst [vmem:[%s5149_s9 + $0xc0] sm:$0xff] %v2908_v6  ;;  %v2970_v10 = vld [vmem:[%s4963_s30 + $0x158] sm:$0xff]  ;;  %v2972_v44 = vld [vmem:[%s4963_s30 + $0x160] sm:$0xff] }
 0x397   : > { %2911 = vst [vmem:[%s5149_s9 + $0xd0] sm:$0xff] %v2910_v48  ;;  %2913 = vst [vmem:[%s5149_s9 + $0xe0] sm:$0xff] %v2912_v28  ;;  %v2974_v35 = vld [vmem:[%s4963_s30 + $0x168] sm:$0xff]  ;;  %v2976_v63 = vld [vmem:[%s4963_s30 + $0x170] sm:$0xff] }
 0x398   : > { %2915 = vst [vmem:[%s5149_s9 + $0xf0] sm:$0xff] %v2914_v62  ;;  %2917 = vst [vmem:[%s5149_s9 + $0x100] sm:$0xff] %v2916_v53  ;;  %v2978_v39 = vld [vmem:[%s4963_s30 + $0x178] sm:$0xff]  ;;  %v2980_v0 = vld [vmem:[%s4963_s30 + $0x180] sm:$0xff] }
 0x399   : > { %2919 = vst [vmem:[%s5149_s9 + $0x110] sm:$0xff] %v2918_v2  ;;  %2921 = vst [vmem:[%s5149_s9 + $0x120] sm:$0xff] %v2920_v38  ;;  %v2982_v41 = vld [vmem:[%s4963_s30 + $0x188] sm:$0xff]  ;;  %v2984_v57 = vld [vmem:[%s4963_s30 + $0x190] sm:$0xff] }
 0x39a   : > { %2923 = vst [vmem:[%s5149_s9 + $0x130] sm:$0xff] %v2922_v21  ;;  %2925 = vst [vmem:[%s5149_s9 + $0x140] sm:$0xff] %v2924_v11  ;;  %v2986_v54 = vld [vmem:[%s4963_s30 + $0x198] sm:$0xff]  ;;  %v2988_v40 = vld [vmem:[%s4963_s30 + $0x1a0] sm:$0xff] }
 0x39b   : > { %2927 = vst [vmem:[%s5149_s9 + $0x150] sm:$0xff] %v2926_v33  ;;  %2929 = vst [vmem:[%s5149_s9 + $0x160] sm:$0xff] %v2928_v3  ;;  %v2990_v12 = vld [vmem:[%s4963_s30 + $0x1a8] sm:$0xff]  ;;  %v2992_v14 = vld [vmem:[%s4963_s30 + $0x1b0] sm:$0xff] }
 0x39c   : > { %2931 = vst [vmem:[%s5149_s9 + $0x170] sm:$0xff] %v2930_v24  ;;  %2933 = vst [vmem:[%s5149_s9 + $0x180] sm:$0xff] %v2932_v50  ;;  %v2994_v16 = vld [vmem:[%s4963_s30 + $0x1b8] sm:$0xff]  ;;  %v2996_v45 = vld [vmem:[%s4963_s30 + $0x1c0] sm:$0xff] }
 0x39d   : > { %2935 = vst [vmem:[%s5149_s9 + $0x190] sm:$0xff] %v2934_v19  ;;  %2937 = vst [vmem:[%s5149_s9 + $0x1a0] sm:$0xff] %v2936_v5  ;;  %v2998_v9 = vld [vmem:[%s4963_s30 + $0x1c8] sm:$0xff]  ;;  %v3000_v32 = vld [vmem:[%s4963_s30 + $0x1d0] sm:$0xff] }
 0x39e   : > { %2939 = vst [vmem:[%s5149_s9 + $0x1b0] sm:$0xff] %v2938_v58  ;;  %2941 = vst [vmem:[%s5149_s9 + $0x1c0] sm:$0xff] %v2940_v37  ;;  %v3002_v55 = vld [vmem:[%s4963_s30 + $0x1d8] sm:$0xff]  ;;  %v3004_v59 = vld [vmem:[%s4963_s30 + $0x1e0] sm:$0xff] }
 0x39f   : > { %2943 = vst [vmem:[%s5149_s9 + $0x1d0] sm:$0xff] %v2942_v56  ;;  %2945 = vst [vmem:[%s5149_s9 + $0x1e0] sm:$0xff] %v2944_v27  ;;  %v3006_v60 = vld [vmem:[%s4963_s30 + $0x1e8] sm:$0xff]  ;;  %v3008_v34 = vld [vmem:[%s4963_s30 + $0x1f0] sm:$0xff] }
 0x3a0   : > { %2947 = vst [vmem:[%s5149_s9 + $0x1f0] sm:$0xff] %v2946_v31  ;;  %2949 = vst [vmem:[%s5149_s9 + $0x200] sm:$0xff] %v2948_v23  ;;  %v3010_v49 = vld [vmem:[%s4963_s30 + $0x1f8] sm:$0xff] }
 0x3a1   : > { %2951 = vst [vmem:[%s5149_s9 + $0x210] sm:$0xff] %v2950_v30  ;;  %2953 = vst [vmem:[%s5149_s9 + $0x220] sm:$0xff] %v2952_v25 }
 0x3a2   : > { %2955 = vst [vmem:[%s5149_s9 + $0x230] sm:$0xff] %v2954_v51  ;;  %2957 = vst [vmem:[%s5149_s9 + $0x240] sm:$0xff] %v2956_v43 }
 0x3a3   : > { %2959 = vst [vmem:[%s5149_s9 + $0x250] sm:$0xff] %v2958_v20  ;;  %2961 = vst [vmem:[%s5149_s9 + $0x260] sm:$0xff] %v2960_v13 }
 0x3a4   : > { %2963 = vst [vmem:[%s5149_s9 + $0x270] sm:$0xff] %v2962_v46  ;;  %2965 = vst [vmem:[%s5149_s9 + $0x280] sm:$0xff] %v2964_v26 }
 0x3a5   : > { %2967 = vst [vmem:[%s5149_s9 + $0x290] sm:$0xff] %v2966_v61  ;;  %2969 = vst [vmem:[%s5149_s9 + $0x2a0] sm:$0xff] %v2968_v29 }
 0x3a6   : > { %2971 = vst [vmem:[%s5149_s9 + $0x2b0] sm:$0xff] %v2970_v10  ;;  %2973 = vst [vmem:[%s5149_s9 + $0x2c0] sm:$0xff] %v2972_v44 }
 0x3a7   : > { %2975 = vst [vmem:[%s5149_s9 + $0x2d0] sm:$0xff] %v2974_v35  ;;  %2977 = vst [vmem:[%s5149_s9 + $0x2e0] sm:$0xff] %v2976_v63 }
 0x3a8   : > { %2979 = vst [vmem:[%s5149_s9 + $0x2f0] sm:$0xff] %v2978_v39  ;;  %2981 = vst [vmem:[%s5149_s9 + $0x300] sm:$0xff] %v2980_v0 }
 0x3a9   : > { %2983 = vst [vmem:[%s5149_s9 + $0x310] sm:$0xff] %v2982_v41  ;;  %2985 = vst [vmem:[%s5149_s9 + $0x320] sm:$0xff] %v2984_v57 }
 0x3aa   : > { %2987 = vst [vmem:[%s5149_s9 + $0x330] sm:$0xff] %v2986_v54  ;;  %2989 = vst [vmem:[%s5149_s9 + $0x340] sm:$0xff] %v2988_v40 }
 0x3ab   : > { %2991 = vst [vmem:[%s5149_s9 + $0x350] sm:$0xff] %v2990_v12  ;;  %2993 = vst [vmem:[%s5149_s9 + $0x360] sm:$0xff] %v2992_v14 }
 0x3ac   : > { %2995 = vst [vmem:[%s5149_s9 + $0x370] sm:$0xff] %v2994_v16  ;;  %2997 = vst [vmem:[%s5149_s9 + $0x380] sm:$0xff] %v2996_v45 }
 0x3ad   : > { %2999 = vst [vmem:[%s5149_s9 + $0x390] sm:$0xff] %v2998_v9  ;;  %3001 = vst [vmem:[%s5149_s9 + $0x3a0] sm:$0xff] %v3000_v32 }
 0x3ae   : > { %3003 = vst [vmem:[%s5149_s9 + $0x3b0] sm:$0xff] %v3002_v55  ;;  %3005 = vst [vmem:[%s5149_s9 + $0x3c0] sm:$0xff] %v3004_v59 }
 0x3af   : > { %3007 = vst [vmem:[%s5149_s9 + $0x3d0] sm:$0xff] %v3006_v60  ;;  %3009 = vst [vmem:[%s5149_s9 + $0x3e0] sm:$0xff] %v3008_v34 }
 0x3b0   : > { %3011 = vst [vmem:[%s5149_s9 + $0x3f0] sm:$0xff] %v3010_v49 }
 0x3b1 PF: > { %s16_s24 = sadd.s32 1, %s3695_s24   ;;  %s5346_s18 = smov %s3675_s19 }
 0x3b2   : > { %p13_p9 = scmp.ge.s32.totalorder %s16_s24, 6   ;;  %s5347_s19 = smov %s3805_s14 }
 0x3b3   : > { %s5348_s20 = smov %s3687_s22  ;;  %s5349_s21 = smov %s3691_s23 }
 0x3b4   : > { %s5350_s22 = smov %s5353_s26  ;;  %s5351_s23 = smov %s5357_s27 }
 0x3b5   :  { %15 = sbr.rel (!%p13_p9) target bundleno = 4 (0x4), region = 156 }
 0x3ba   :  { %3027 = vsyncpa [#allocation4], 1 }
 0x3bb   :  { %3029 = vsyncpa [#allocation4 + $0x1], 1 }

</bundles_post_ra>
